<compile_context>
chip_gen: v5e
topology: v5e:2x2
jax: 0.10.0
libtpu: 0.0.40
codegen_flags: <defaults>
</compile_context>

<pallas_src>
import math

import jax
import jax.numpy as jnp
from jax.experimental import pallas as pl
from jax.experimental.pallas import tpu as pltpu

# ---------------------------------------------------------------------------
# Model configuration (small, consistent with the module's __init__)
# ---------------------------------------------------------------------------
INPUT_CHANNELS = 4                    # runtime_cfg['num_point_features']
SA_CHANNELS = [[16, 16, 32], [32, 32, 64]]
FP_CHANNELS = [[64, 64], [32, 32]]
STRIDES = [4, 4]
NUM_SECTORS = [1, 1]                  # kept for config parity (sector FPS not used)
NUM_NEIGHBORS = 8
RETURN_POLAR = False
SCALE_T = 1

SA_TILE_GROUPS = 512                  # groups per grid step -> 4096 MLP rows/step
FP_TILE_ROWS = 2048                   # dense points per grid step


def _round_up(x, m):
    return ((x + m - 1) // m) * m


def _pick_tile(n_rows, max_tile):
    """Large row tiles amortize the ~0.35us/step overhead, but keep >=2 grid
    steps for non-tiny inputs so v7x's two TensorCores both get work."""
    n8 = _round_up(max(n_rows, 1), 8)
    if n8 <= 32:
        return n8                           # single full block (tiny input)
    half = _round_up(-(-n8 // 2), 16)       # ceil(n/2), 16-aligned for bf16 blocks
    return min(max_tile, half)


# ---------------------------------------------------------------------------
# Fused SA kernel: pointwise MLP (bf16 matmuls, f32 accum) + K-neighbor max.
# ---------------------------------------------------------------------------
def _make_sa_kernel(num_layers, k):
    def kernel(*refs):
        x_ref = refs[0]
        o_ref = refs[-1]
        p = refs[1:-1]                      # (w, b) * num_layers, weights bf16
        y = x_ref[...]                      # [TILE*K, Cin] bf16
        for l in range(num_layers):
            w = p[2 * l][...]
            b = p[2 * l + 1][...]
            y = jnp.dot(y.astype(jnp.bfloat16), w,
                        preferred_element_type=jnp.float32) + b
            y = jnp.maximum(y, 0.0)
        rows, cout = y.shape
        y3 = y.reshape(rows // k, k, cout)  # K==8 matches the sublane tile
        o_ref[...] = jnp.max(y3, axis=1).astype(o_ref.dtype)
    return kernel


def sa_mlp_maxpool(grouped, layers, k, out_dtype=jnp.bfloat16):
    """grouped: [M, K, Cin] bf16 (channel-padded) -> pooled [M, Cout]; one call."""
    m, kk, cin = grouped.shape
    assert kk == k
    tile = _pick_tile(m, SA_TILE_GROUPS)
    m_pad = _round_up(m, tile)
    x = grouped
    if m_pad != m:
        x = jnp.pad(x, ((0, m_pad - m), (0, 0), (0, 0)))
    x = x.reshape(m_pad * k, cin)           # contiguous reshape -> free
    cout = layers[-1][0].shape[1]

    in_specs = [pl.BlockSpec((tile * k, cin), lambda i: (i, 0))]
    args = [x]
    flops = 0
    wbytes = 0
    for (w, b) in layers:                   # weights resident in VMEM (constant idx)
        ci, co = w.shape
        in_specs.append(pl.BlockSpec((ci, co), lambda i: (0, 0)))
        in_specs.append(pl.BlockSpec((1, co), lambda i: (0, 0)))
        args.append(w)
        args.append(b.reshape(1, co))
        flops += 2 * m_pad * k * ci * co
        wbytes += ci * co * 2 + co * 4
    bytes_accessed = (m_pad * k * cin * 2 + wbytes
                      + m_pad * cout * jnp.dtype(out_dtype).itemsize)

    out = pl.pallas_call(
        _make_sa_kernel(len(layers), k),
        out_shape=jax.ShapeDtypeStruct((m_pad, cout), out_dtype),
        grid=(m_pad // tile,),
        in_specs=in_specs,
        out_specs=pl.BlockSpec((tile, cout), lambda i: (i, 0)),
        compiler_params=pltpu.CompilerParams(dimension_semantics=("parallel",)),
        cost_estimate=pl.CostEstimate(flops=flops, transcendentals=0,
                                      bytes_accessed=bytes_accessed),
    )(*args)
    return out[:m]


# ---------------------------------------------------------------------------
# Fused FP kernel: 3-NN weighted interpolation + 2-layer pointwise MLP.
# The skip-feature concat is folded into a split first-layer weight; the three
# gathered neighbors arrive as one [tile, 3*Cc] block and are separated with
# static in-kernel slices (no wrapper-side splits).
# ---------------------------------------------------------------------------
def _make_fp_kernel(num_layers, cc):
    def kernel(*refs):
        g_ref, iw_ref, skip_ref = refs[0:3]
        o_ref = refs[-1]
        p = refs[3:-1]                      # w0a, w0b, b0, then (w, b) per layer
        g = g_ref[...]                      # [TILE, 3*Cc] bf16
        iw = iw_ref[...]                    # [TILE, 3] f32 interpolation weights
        interp = (g[:, 0 * cc:1 * cc] * iw[:, 0:1]
                  + g[:, 1 * cc:2 * cc] * iw[:, 1:2]
                  + g[:, 2 * cc:3 * cc] * iw[:, 2:3])
        y = (jnp.dot(interp.astype(jnp.bfloat16), p[0][...],
                     preferred_element_type=jnp.float32) +
             jnp.dot(skip_ref[...], p[1][...],
                     preferred_element_type=jnp.float32) +
             p[2][...])
        y = jnp.maximum(y, 0.0)
        for l in range(1, num_layers):
            w = p[3 + 2 * (l - 1)][...]
            b = p[4 + 2 * (l - 1)][...]
            y = jnp.dot(y.astype(jnp.bfloat16), w,
                        preferred_element_type=jnp.float32) + b
            y = jnp.maximum(y, 0.0)
        o_ref[...] = y.astype(o_ref.dtype)
    return kernel


def fp_mlp(gathered, iweights, skip, layers, out_dtype=jnp.bfloat16):
    """gathered: [N, 3, Cc] coarse feats of 3 NN, iweights: [N, 3], skip: [N, Cs]."""
    n, three, cc = gathered.shape
    cs = skip.shape[1]
    tile = _pick_tile(n, FP_TILE_ROWS)
    n_pad = _round_up(n, tile)
    pad = n_pad - n

    g2d = gathered.astype(jnp.bfloat16).reshape(n, three * cc)   # contiguous -> free
    sk = skip.astype(jnp.bfloat16)
    iw = iweights
    if pad:
        g2d = jnp.pad(g2d, ((0, pad), (0, 0)))
        sk = jnp.pad(sk, ((0, pad), (0, 0)))
        iw = jnp.pad(iw, ((0, pad), (0, 0)))

    (w0, b0) = layers[0]
    c0 = w0.shape[1]
    w0a, w0b = w0[:cc], w0[cc:]             # split weight == concat([interp, skip])
    cout = layers[-1][0].shape[1]

    in_specs = [
        pl.BlockSpec((tile, three * cc), lambda i: (i, 0)),
        pl.BlockSpec((tile, 3), lambda i: (i, 0)),
        pl.BlockSpec((tile, cs), lambda i: (i, 0)),
        pl.BlockSpec((cc, c0), lambda i: (0, 0)),
        pl.BlockSpec((cs, c0), lambda i: (0, 0)),
        pl.BlockSpec((1, c0), lambda i: (0, 0)),
    ]
    args = [g2d, iw, sk, w0a, w0b, b0.reshape(1, c0)]
    flops = n_pad * (6 * cc + 2 * cc * c0 + 2 * cs * c0)
    wbytes = (cc + cs) * c0 * 2 + c0 * 4
    for (w, b) in layers[1:]:
        ci, co = w.shape
        in_specs.append(pl.BlockSpec((ci, co), lambda i: (0, 0)))
        in_specs.append(pl.BlockSpec((1, co), lambda i: (0, 0)))
        args.append(w)
        args.append(b.reshape(1, co))
        flops += 2 * n_pad * ci * co
        wbytes += ci * co * 2 + co * 4
    bytes_accessed = (n_pad * (three * cc * 2 + 3 * 4 + cs * 2) + wbytes
                      + n_pad * cout * jnp.dtype(out_dtype).itemsize)

    out = pl.pallas_call(
        _make_fp_kernel(len(layers), cc),
        out_shape=jax.ShapeDtypeStruct((n_pad, cout), out_dtype),
        grid=(n_pad // tile,),
        in_specs=in_specs,
        out_specs=pl.BlockSpec((tile, cout), lambda i: (i, 0)),
        compiler_params=pltpu.CompilerParams(dimension_semantics=("parallel",)),
        cost_estimate=pl.CostEstimate(flops=flops, transcendentals=0,
                                      bytes_accessed=bytes_accessed),
    )(*args)
    return out[:n]


# ---------------------------------------------------------------------------
# JAX glue: neighbor search, sampling, module forwards
# ---------------------------------------------------------------------------
def knn_indices(query_pos, query_batch, src_pos, src_batch, k):
    # TODO(synk): O(Nq*Ns) dense KNN; at realistic point counts this should be a
    # blocked Pallas KNN (MXU -2*q.s^T, running in-VMEM top-k, segment masking).
    d2 = jnp.sum((query_pos[:, None, :] - src_pos[None, :, :]) ** 2, axis=-1)
    mask = query_batch[:, None] != src_batch[None, :]
    d2 = jnp.where(mask, jnp.inf, d2)
    neg_vals, idx = jax.lax.top_k(-d2, k)
    d2k = -neg_vals
    valid = jnp.isfinite(d2k)
    return idx, d2k, valid


def sa_forward(pos, feat, batch_idx, stride, nsample, layers):
    """PointNetSetAbstractionCN2Nor: subsample -> KNN group -> fused MLP+max."""
    n = pos.shape[0]
    # TODO(synk): sectorized farthest-point sampling has no clean Pallas
    # equivalent; deterministic strided subsampling is used instead.
    sel = jnp.arange(0, n, stride)
    new_pos = pos[sel]
    new_batch = batch_idx[sel]

    idx, _, valid = knn_indices(new_pos, new_batch, pos, batch_idx, nsample)   # [M, K]
    # Cross-batch (invalid) fill neighbors -> nearest valid neighbor, so they
    # can never win the max-pool.
    idx = jnp.where(valid, idx, idx[:, :1])

    # TODO(synk): this K-way duplicated gather could move in-kernel (scalar-
    # prefetched idx + row DMA from a resident feat page); built in bf16 here
    # to halve its HBM traffic instead.
    rel = (pos[idx] - new_pos[:, None, :]).astype(jnp.bfloat16)
    nbr = feat[idx].astype(jnp.bfloat16)
    grouped = jnp.concatenate([rel, nbr], axis=-1)                 # [M, K, 3+Cin]
    cin_pad = layers[0][0].shape[0]          # first-layer rows (8-aligned)
    if cin_pad != grouped.shape[-1]:
        grouped = jnp.pad(grouped, ((0, 0), (0, 0), (0, cin_pad - grouped.shape[-1])))

    new_feat = sa_mlp_maxpool(grouped, layers, nsample, out_dtype=jnp.bfloat16)
    return new_pos, new_feat, new_batch


def fp_forward(pos_dense, feat_dense, batch_dense, pos_coarse, feat_coarse,
               batch_coarse, layers, out_dtype):
    """PointNetFeaturePropagationCN2: 3-NN inverse-distance interpolation of
    coarse feats + concat with skip feats + pointwise MLP (fused in Pallas)."""
    idx, d2, _ = knn_indices(pos_dense, batch_dense, pos_coarse, batch_coarse, 3)
    dist = jnp.sqrt(jnp.maximum(d2, 0.0))
    w = 1.0 / (dist + 1e-8)
    w = jnp.where(jnp.isfinite(w), w, 0.0)          # masked (inf-distance) pairs -> 0
    denom = jnp.sum(w, axis=1, keepdims=True)
    w = w / jnp.maximum(denom, 1e-12)               # guard: <3 coarse points in batch
    gathered = feat_coarse[idx]                     # [N, 3, Cc]  (replaces one-hot matmul)
    return fp_mlp(gathered, w, feat_dense, layers, out_dtype=out_dtype)


def pointnet2_repsurf_forward(point_bxyz, point_feat, params):
    """Forward pass mirroring PointNet2RepSurf.forward (offset-batched points)."""
    pos = point_bxyz[:, 1:4]
    batch_idx = jnp.round(point_bxyz[:, 0]).astype(jnp.int32)
    feat = point_feat

    data_stack = [(pos, feat, batch_idx)]
    cur = (pos, feat, batch_idx)
    for stride, layers in zip(STRIDES, params["sa"]):
        cur = sa_forward(cur[0], cur[1], cur[2], stride, NUM_NEIGHBORS, layers)
        data_stack.append(cur)

    cur = data_stack.pop()
    n_fp = len(params["fp"])
    for li, layers in enumerate(params["fp"]):
        prev = data_stack.pop()
        out_dtype = jnp.float32 if li == n_fp - 1 else jnp.bfloat16
        new_feat = fp_forward(prev[0], prev[1], prev[2], cur[0], cur[1], cur[2],
                              layers, out_dtype)
        cur = (prev[0], new_feat, prev[2])

    # convert_to_bxyz: prepend batch index column to xyz
    out_bxyz = jnp.concatenate([cur[2][:, None].astype(jnp.float32), cur[0]], axis=-1)
    out_feat = cur[1]
    return out_bxyz, out_feat


# ---------------------------------------------------------------------------
# Deterministic parameter construction (shapes follow __init__); BN folded
# into the weights (W' = W * scale, b' = beta), weights stored in bf16.
# First SA layer contraction dim is zero-padded to an 8-multiple.
# ---------------------------------------------------------------------------
def make_params(key):
    def mlp_layers(key, cin, channels, pad_first_cin=False):
        layers = []
        last = cin
        for li, c in enumerate(channels):
            key, k1, k2, k3 = jax.random.split(key, 4)
            w = jax.random.normal(k1, (last, c), jnp.float32) / math.sqrt(last)
            gamma = 1.0 + 0.1 * jax.random.normal(k2, (c,), jnp.float32)
            beta = 0.1 * jax.random.normal(k3, (c,), jnp.float32)
            # fold BN (running_mean=0, running_var=1, eps=1e-5) into the weight
            scale = gamma / jnp.sqrt(1.0 + 1e-5)
            w_folded = w * scale[None, :]
            if li == 0 and pad_first_cin:
                cin_pad = _round_up(last, 8)      # keep MXU contraction packed
                if cin_pad != last:
                    w_folded = jnp.pad(w_folded, ((0, cin_pad - last), (0, 0)))
            layers.append((w_folded.astype(jnp.bfloat16), beta))
            last = c
        return key, layers, last

    params = {"sa": [], "fp": []}
    cur = INPUT_CHANNELS
    channel_stack = []
    extra = 3 + (3 if RETURN_POLAR else 0)   # relative xyz (+ polar)
    for sa_channel in SA_CHANNELS:
        sa_channel = [int(c * SCALE_T) for c in sa_channel]
        key, layers, _ = mlp_layers(key, cur + extra, sa_channel, pad_first_cin=True)
        params["sa"].append(layers)
        channel_stack.append(cur)
        cur = sa_channel[-1]
    for fp_channel in FP_CHANNELS:
        fp_channel = [int(c * SCALE_T) for c in fp_channel]
        skip = channel_stack.pop()
        key, layers, _ = mlp_layers(key, cur + skip, fp_channel, pad_first_cin=False)
        params["fp"].append(layers)
        cur = fp_channel[-1]
    return params, cur


# ---------------------------------------------------------------------------
# Main
# ---------------------------------------------------------------------------
if __name__ == "__main__":
    key = jax.random.PRNGKey(0)
    params, num_out_feat = make_params(key)

    B = 2
    N_PER_BATCH = 64
    N = B * N_PER_BATCH

    k_pos, k_feat = jax.random.split(jax.random.PRNGKey(0), 2)
    xyz = jax.random.normal(k_pos, (N, 3), jnp.float32)
    batch_col = jnp.repeat(jnp.arange(B, dtype=jnp.float32), N_PER_BATCH)[:, None]
    point_bxyz = jnp.concatenate([batch_col, xyz], axis=-1)          # [N, 4]
    point_feat = jax.random.normal(k_feat, (N, INPUT_CHANNELS), jnp.float32)

    fwd = jax.jit(lambda b, f: pointnet2_repsurf_forward(b, f, params))
    out_bxyz, out_feat = fwd(point_bxyz, point_feat)
    jax.block_until_ready((out_bxyz, out_feat))

    assert out_bxyz.shape == (N, 4)
    assert out_feat.shape == (N, num_out_feat)
    assert bool(jnp.all(jnp.isfinite(out_feat)))
    print("KERNEL_OK")
</pallas_src>

<mosaic_0001>
module attributes {stable_mosaic.version = 11 : i64} {
  func.func @kernel(%arg0: i32, %arg1: memref<256x8xbf16, #tpu.memory_space<vmem>>, %arg2: memref<8x16xbf16, #tpu.memory_space<vmem>>, %arg3: memref<1x16xf32, #tpu.memory_space<vmem>>, %arg4: memref<16x16xbf16, #tpu.memory_space<vmem>>, %arg5: memref<1x16xf32, #tpu.memory_space<vmem>>, %arg6: memref<16x32xbf16, #tpu.memory_space<vmem>>, %arg7: memref<1x32xf32, #tpu.memory_space<vmem>>, %arg8: memref<32x32xbf16, #tpu.memory_space<vmem>>) attributes {dimension_semantics = [#tpu.dimension_semantics<parallel>], iteration_bounds = array<i64: 1>, scalar_prefetch = 0 : i64, scratch_operands = 0 : i64, tpu.core_type = #tpu.core_type<tc>, window_params = [{transform_indices = @transform_0, window_bounds = array<i64: 256, 8>}, {pipeline_mode = #tpu.pipeline_mode<synchronous>, transform_indices = @transform_1, window_bounds = array<i64: 8, 16>}, {pipeline_mode = #tpu.pipeline_mode<synchronous>, transform_indices = @transform_2, window_bounds = array<i64: 1, 16>}, {pipeline_mode = #tpu.pipeline_mode<synchronous>, transform_indices = @transform_3, window_bounds = array<i64: 16, 16>}, {pipeline_mode = #tpu.pipeline_mode<synchronous>, transform_indices = @transform_4, window_bounds = array<i64: 1, 16>}, {pipeline_mode = #tpu.pipeline_mode<synchronous>, transform_indices = @transform_5, window_bounds = array<i64: 16, 32>}, {pipeline_mode = #tpu.pipeline_mode<synchronous>, transform_indices = @transform_6, window_bounds = array<i64: 1, 32>}, {transform_indices = @transform_7, window_bounds = array<i64: 32, 32>}]} {
    %c0 = arith.constant 0 : index
    %c0_0 = arith.constant 0 : index
    %0 = vector.load %arg1[%c0, %c0_0] : memref<256x8xbf16, #tpu.memory_space<vmem>>, vector<256x8xbf16>
    %c0_1 = arith.constant 0 : index
    %c0_2 = arith.constant 0 : index
    %1 = vector.load %arg2[%c0_1, %c0_2] : memref<8x16xbf16, #tpu.memory_space<vmem>>, vector<8x16xbf16>
    %c0_3 = arith.constant 0 : index
    %c0_4 = arith.constant 0 : index
    %2 = vector.load %arg3[%c0_3, %c0_4] : memref<1x16xf32, #tpu.memory_space<vmem>>, vector<1x16xf32>
    %cst = arith.constant dense<0.000000e+00> : vector<256x16xf32>
    %3 = tpu.matmul %0, %1, %cst {dimension_numbers = #tpu.dot_dimension_numbers<[1], [0], [0], [1], [0, 0, 1, 1], [], []>} : vector<256x8xbf16>, vector<8x16xbf16>, vector<256x16xf32> -> vector<256x16xf32>
    %4 = vector.broadcast %2 : vector<1x16xf32> to vector<256x16xf32>
    %5 = arith.addf %3, %4 : vector<256x16xf32>
    %cst_5 = arith.constant 0.000000e+00 : f32
    %6 = vector.broadcast %cst_5 : f32 to vector<256x16xf32>
    %7 = arith.maximumf %5, %6 : vector<256x16xf32>
    %c0_6 = arith.constant 0 : index
    %c0_7 = arith.constant 0 : index
    %8 = vector.load %arg4[%c0_6, %c0_7] : memref<16x16xbf16, #tpu.memory_space<vmem>>, vector<16x16xbf16>
    %c0_8 = arith.constant 0 : index
    %c0_9 = arith.constant 0 : index
    %9 = vector.load %arg5[%c0_8, %c0_9] : memref<1x16xf32, #tpu.memory_space<vmem>>, vector<1x16xf32>
    %10 = arith.truncf %7 : vector<256x16xf32> to vector<256x16xbf16>
    %cst_10 = arith.constant dense<0.000000e+00> : vector<256x16xf32>
    %11 = tpu.matmul %10, %8, %cst_10 {dimension_numbers = #tpu.dot_dimension_numbers<[1], [0], [0], [1], [0, 0, 1, 1], [], []>} : vector<256x16xbf16>, vector<16x16xbf16>, vector<256x16xf32> -> vector<256x16xf32>
    %12 = vector.broadcast %9 : vector<1x16xf32> to vector<256x16xf32>
    %13 = arith.addf %11, %12 : vector<256x16xf32>
    %cst_11 = arith.constant 0.000000e+00 : f32
    %14 = vector.broadcast %cst_11 : f32 to vector<256x16xf32>
    %15 = arith.maximumf %13, %14 : vector<256x16xf32>
    %c0_12 = arith.constant 0 : index
    %c0_13 = arith.constant 0 : index
    %16 = vector.load %arg6[%c0_12, %c0_13] : memref<16x32xbf16, #tpu.memory_space<vmem>>, vector<16x32xbf16>
    %c0_14 = arith.constant 0 : index
    %c0_15 = arith.constant 0 : index
    %17 = vector.load %arg7[%c0_14, %c0_15] : memref<1x32xf32, #tpu.memory_space<vmem>>, vector<1x32xf32>
    %18 = arith.truncf %15 : vector<256x16xf32> to vector<256x16xbf16>
    %cst_16 = arith.constant dense<0.000000e+00> : vector<256x32xf32>
    %19 = tpu.matmul %18, %16, %cst_16 {dimension_numbers = #tpu.dot_dimension_numbers<[1], [0], [0], [1], [0, 0, 1, 1], [], []>} : vector<256x16xbf16>, vector<16x32xbf16>, vector<256x32xf32> -> vector<256x32xf32>
    %20 = vector.broadcast %17 : vector<1x32xf32> to vector<256x32xf32>
    %21 = arith.addf %19, %20 : vector<256x32xf32>
    %cst_17 = arith.constant 0.000000e+00 : f32
    %22 = vector.broadcast %cst_17 : f32 to vector<256x32xf32>
    %23 = arith.maximumf %21, %22 : vector<256x32xf32>
    %24 = vector.shape_cast %23 : vector<256x32xf32> to vector<32x8x32xf32>
    %cst_18 = arith.constant dense<0xFF800000> : vector<32x32xf32>
    %25 = vector.multi_reduction <maximumf>, %24, %cst_18 [1] : vector<32x8x32xf32> to vector<32x32xf32>
    %26 = arith.truncf %25 : vector<32x32xf32> to vector<32x32xbf16>
    %c0_19 = arith.constant 0 : index
    %c0_20 = arith.constant 0 : index
    %27 = vector.load %arg8[%c0_19, %c0_20] : memref<32x32xbf16, #tpu.memory_space<vmem>>, vector<32x32xbf16>
    tpu.vector_store %arg8[%c0_19, %c0_20], %26 {strides = array<i32>} : memref<32x32xbf16, #tpu.memory_space<vmem>>, vector<32x32xbf16>,
    return
  }
  func.func @transform_0(%arg0: i32) -> (i32, i32) {
    %c0_i32 = arith.constant 0 : i32
    %c0_i32_0 = arith.constant 0 : i32
    return %arg0, %c0_i32 : i32, i32
  }
  func.func @transform_1(%arg0: i32) -> (i32, i32) {
    %c0_i32 = arith.constant 0 : i32
    %c0_i32_0 = arith.constant 0 : i32
    %c0_i32_1 = arith.constant 0 : i32
    return %c0_i32, %c0_i32_0 : i32, i32
  }
  func.func @transform_2(%arg0: i32) -> (i32, i32) {
    %c0_i32 = arith.constant 0 : i32
    %c0_i32_0 = arith.constant 0 : i32
    %c0_i32_1 = arith.constant 0 : i32
    return %c0_i32, %c0_i32_0 : i32, i32
  }
  func.func @transform_3(%arg0: i32) -> (i32, i32) {
    %c0_i32 = arith.constant 0 : i32
    %c0_i32_0 = arith.constant 0 : i32
    %c0_i32_1 = arith.constant 0 : i32
    return %c0_i32, %c0_i32_0 : i32, i32
  }
  func.func @transform_4(%arg0: i32) -> (i32, i32) {
    %c0_i32 = arith.constant 0 : i32
    %c0_i32_0 = arith.constant 0 : i32
    %c0_i32_1 = arith.constant 0 : i32
    return %c0_i32, %c0_i32_0 : i32, i32
  }
  func.func @transform_5(%arg0: i32) -> (i32, i32) {
    %c0_i32 = arith.constant 0 : i32
    %c0_i32_0 = arith.constant 0 : i32
    %c0_i32_1 = arith.constant 0 : i32
    return %c0_i32, %c0_i32_0 : i32, i32
  }
  func.func @transform_6(%arg0: i32) -> (i32, i32) {
    %c0_i32 = arith.constant 0 : i32
    %c0_i32_0 = arith.constant 0 : i32
    %c0_i32_1 = arith.constant 0 : i32
    return %c0_i32, %c0_i32_0 : i32, i32
  }
  func.func @transform_7(%arg0: i32) -> (i32, i32) {
    %c0_i32 = arith.constant 0 : i32
    %c0_i32_0 = arith.constant 0 : i32
    return %arg0, %c0_i32 : i32, i32
  }
}

module attributes {stable_mosaic.version = 11 : i64} {
  func.func @kernel(%arg0: i32, %arg1: memref<64x40xbf16, #tpu.memory_space<vmem>>, %arg2: memref<40x32xbf16, #tpu.memory_space<vmem>>, %arg3: memref<1x32xf32, #tpu.memory_space<vmem>>, %arg4: memref<32x32xbf16, #tpu.memory_space<vmem>>, %arg5: memref<1x32xf32, #tpu.memory_space<vmem>>, %arg6: memref<32x64xbf16, #tpu.memory_space<vmem>>, %arg7: memref<1x64xf32, #tpu.memory_space<vmem>>, %arg8: memref<8x64xbf16, #tpu.memory_space<vmem>>) attributes {dimension_semantics = [#tpu.dimension_semantics<parallel>], iteration_bounds = array<i64: 1>, scalar_prefetch = 0 : i64, scratch_operands = 0 : i64, tpu.core_type = #tpu.core_type<tc>, window_params = [{transform_indices = @transform_0, window_bounds = array<i64: 64, 40>}, {pipeline_mode = #tpu.pipeline_mode<synchronous>, transform_indices = @transform_1, window_bounds = array<i64: 40, 32>}, {pipeline_mode = #tpu.pipeline_mode<synchronous>, transform_indices = @transform_2, window_bounds = array<i64: 1, 32>}, {pipeline_mode = #tpu.pipeline_mode<synchronous>, transform_indices = @transform_3, window_bounds = array<i64: 32, 32>}, {pipeline_mode = #tpu.pipeline_mode<synchronous>, transform_indices = @transform_4, window_bounds = array<i64: 1, 32>}, {pipeline_mode = #tpu.pipeline_mode<synchronous>, transform_indices = @transform_5, window_bounds = array<i64: 32, 64>}, {pipeline_mode = #tpu.pipeline_mode<synchronous>, transform_indices = @transform_6, window_bounds = array<i64: 1, 64>}, {transform_indices = @transform_7, window_bounds = array<i64: 8, 64>}]} {
    %c0 = arith.constant 0 : index
    %c0_0 = arith.constant 0 : index
    %0 = vector.load %arg1[%c0, %c0_0] : memref<64x40xbf16, #tpu.memory_space<vmem>>, vector<64x40xbf16>
    %c0_1 = arith.constant 0 : index
    %c0_2 = arith.constant 0 : index
    %1 = vector.load %arg2[%c0_1, %c0_2] : memref<40x32xbf16, #tpu.memory_space<vmem>>, vector<40x32xbf16>
    %c0_3 = arith.constant 0 : index
    %c0_4 = arith.constant 0 : index
    %2 = vector.load %arg3[%c0_3, %c0_4] : memref<1x32xf32, #tpu.memory_space<vmem>>, vector<1x32xf32>
    %cst = arith.constant dense<0.000000e+00> : vector<64x32xf32>
    %3 = tpu.matmul %0, %1, %cst {dimension_numbers = #tpu.dot_dimension_numbers<[1], [0], [0], [1], [0, 0, 1, 1], [], []>} : vector<64x40xbf16>, vector<40x32xbf16>, vector<64x32xf32> -> vector<64x32xf32>
    %4 = vector.broadcast %2 : vector<1x32xf32> to vector<64x32xf32>
    %5 = arith.addf %3, %4 : vector<64x32xf32>
    %cst_5 = arith.constant 0.000000e+00 : f32
    %6 = vector.broadcast %cst_5 : f32 to vector<64x32xf32>
    %7 = arith.maximumf %5, %6 : vector<64x32xf32>
    %c0_6 = arith.constant 0 : index
    %c0_7 = arith.constant 0 : index
    %8 = vector.load %arg4[%c0_6, %c0_7] : memref<32x32xbf16, #tpu.memory_space<vmem>>, vector<32x32xbf16>
    %c0_8 = arith.constant 0 : index
    %c0_9 = arith.constant 0 : index
    %9 = vector.load %arg5[%c0_8, %c0_9] : memref<1x32xf32, #tpu.memory_space<vmem>>, vector<1x32xf32>
    %10 = arith.truncf %7 : vector<64x32xf32> to vector<64x32xbf16>
    %cst_10 = arith.constant dense<0.000000e+00> : vector<64x32xf32>
    %11 = tpu.matmul %10, %8, %cst_10 {dimension_numbers = #tpu.dot_dimension_numbers<[1], [0], [0], [1], [0, 0, 1, 1], [], []>} : vector<64x32xbf16>, vector<32x32xbf16>, vector<64x32xf32> -> vector<64x32xf32>
    %12 = vector.broadcast %9 : vector<1x32xf32> to vector<64x32xf32>
    %13 = arith.addf %11, %12 : vector<64x32xf32>
    %cst_11 = arith.constant 0.000000e+00 : f32
    %14 = vector.broadcast %cst_11 : f32 to vector<64x32xf32>
    %15 = arith.maximumf %13, %14 : vector<64x32xf32>
    %c0_12 = arith.constant 0 : index
    %c0_13 = arith.constant 0 : index
    %16 = vector.load %arg6[%c0_12, %c0_13] : memref<32x64xbf16, #tpu.memory_space<vmem>>, vector<32x64xbf16>
    %c0_14 = arith.constant 0 : index
    %c0_15 = arith.constant 0 : index
    %17 = vector.load %arg7[%c0_14, %c0_15] : memref<1x64xf32, #tpu.memory_space<vmem>>, vector<1x64xf32>
    %18 = arith.truncf %15 : vector<64x32xf32> to vector<64x32xbf16>
    %cst_16 = arith.constant dense<0.000000e+00> : vector<64x64xf32>
    %19 = tpu.matmul %18, %16, %cst_16 {dimension_numbers = #tpu.dot_dimension_numbers<[1], [0], [0], [1], [0, 0, 1, 1], [], []>} : vector<64x32xbf16>, vector<32x64xbf16>, vector<64x64xf32> -> vector<64x64xf32>
    %20 = vector.broadcast %17 : vector<1x64xf32> to vector<64x64xf32>
    %21 = arith.addf %19, %20 : vector<64x64xf32>
    %cst_17 = arith.constant 0.000000e+00 : f32
    %22 = vector.broadcast %cst_17 : f32 to vector<64x64xf32>
    %23 = arith.maximumf %21, %22 : vector<64x64xf32>
    %24 = vector.shape_cast %23 : vector<64x64xf32> to vector<8x8x64xf32>
    %cst_18 = arith.constant dense<0xFF800000> : vector<8x64xf32>
    %25 = vector.multi_reduction <maximumf>, %24, %cst_18 [1] : vector<8x8x64xf32> to vector<8x64xf32>
    %26 = arith.truncf %25 : vector<8x64xf32> to vector<8x64xbf16>
    %c0_19 = arith.constant 0 : index
    %c0_20 = arith.constant 0 : index
    %27 = vector.load %arg8[%c0_19, %c0_20] : memref<8x64xbf16, #tpu.memory_space<vmem>>, vector<8x64xbf16>
    tpu.vector_store %arg8[%c0_19, %c0_20], %26 {strides = array<i32>} : memref<8x64xbf16, #tpu.memory_space<vmem>>, vector<8x64xbf16>,
    return
  }
  func.func @transform_0(%arg0: i32) -> (i32, i32) {
    %c0_i32 = arith.constant 0 : i32
    %c0_i32_0 = arith.constant 0 : i32
    return %arg0, %c0_i32 : i32, i32
  }
  func.func @transform_1(%arg0: i32) -> (i32, i32) {
    %c0_i32 = arith.constant 0 : i32
    %c0_i32_0 = arith.constant 0 : i32
    %c0_i32_1 = arith.constant 0 : i32
    return %c0_i32, %c0_i32_0 : i32, i32
  }
  func.func @transform_2(%arg0: i32) -> (i32, i32) {
    %c0_i32 = arith.constant 0 : i32
    %c0_i32_0 = arith.constant 0 : i32
    %c0_i32_1 = arith.constant 0 : i32
    return %c0_i32, %c0_i32_0 : i32, i32
  }
  func.func @transform_3(%arg0: i32) -> (i32, i32) {
    %c0_i32 = arith.constant 0 : i32
    %c0_i32_0 = arith.constant 0 : i32
    %c0_i32_1 = arith.constant 0 : i32
    return %c0_i32, %c0_i32_0 : i32, i32
  }
  func.func @transform_4(%arg0: i32) -> (i32, i32) {
    %c0_i32 = arith.constant 0 : i32
    %c0_i32_0 = arith.constant 0 : i32
    %c0_i32_1 = arith.constant 0 : i32
    return %c0_i32, %c0_i32_0 : i32, i32
  }
  func.func @transform_5(%arg0: i32) -> (i32, i32) {
    %c0_i32 = arith.constant 0 : i32
    %c0_i32_0 = arith.constant 0 : i32
    %c0_i32_1 = arith.constant 0 : i32
    return %c0_i32, %c0_i32_0 : i32, i32
  }
  func.func @transform_6(%arg0: i32) -> (i32, i32) {
    %c0_i32 = arith.constant 0 : i32
    %c0_i32_0 = arith.constant 0 : i32
    %c0_i32_1 = arith.constant 0 : i32
    return %c0_i32, %c0_i32_0 : i32, i32
  }
  func.func @transform_7(%arg0: i32) -> (i32, i32) {
    %c0_i32 = arith.constant 0 : i32
    %c0_i32_0 = arith.constant 0 : i32
    return %arg0, %c0_i32 : i32, i32
  }
}

module attributes {stable_mosaic.version = 11 : i64} {
  func.func @kernel(%arg0: i32, %arg1: memref<32x192xbf16, #tpu.memory_space<vmem>>, %arg2: memref<32x3xf32, #tpu.memory_space<vmem>>, %arg3: memref<32x32xbf16, #tpu.memory_space<vmem>>, %arg4: memref<64x64xbf16, #tpu.memory_space<vmem>>, %arg5: memref<32x64xbf16, #tpu.memory_space<vmem>>, %arg6: memref<1x64xf32, #tpu.memory_space<vmem>>, %arg7: memref<64x64xbf16, #tpu.memory_space<vmem>>, %arg8: memref<1x64xf32, #tpu.memory_space<vmem>>, %arg9: memref<32x64xbf16, #tpu.memory_space<vmem>>) attributes {dimension_semantics = [#tpu.dimension_semantics<parallel>], iteration_bounds = array<i64: 1>, scalar_prefetch = 0 : i64, scratch_operands = 0 : i64, tpu.core_type = #tpu.core_type<tc>, window_params = [{transform_indices = @transform_0, window_bounds = array<i64: 32, 192>}, {transform_indices = @transform_1, window_bounds = array<i64: 32, 3>}, {transform_indices = @transform_2, window_bounds = array<i64: 32, 32>}, {pipeline_mode = #tpu.pipeline_mode<synchronous>, transform_indices = @transform_3, window_bounds = array<i64: 64, 64>}, {pipeline_mode = #tpu.pipeline_mode<synchronous>, transform_indices = @transform_4, window_bounds = array<i64: 32, 64>}, {pipeline_mode = #tpu.pipeline_mode<synchronous>, transform_indices = @transform_5, window_bounds = array<i64: 1, 64>}, {pipeline_mode = #tpu.pipeline_mode<synchronous>, transform_indices = @transform_6, window_bounds = array<i64: 64, 64>}, {pipeline_mode = #tpu.pipeline_mode<synchronous>, transform_indices = @transform_7, window_bounds = array<i64: 1, 64>}, {transform_indices = @transform_8, window_bounds = array<i64: 32, 64>}]} {
    %c0 = arith.constant 0 : index
    %c0_0 = arith.constant 0 : index
    %0 = vector.load %arg1[%c0, %c0_0] : memref<32x192xbf16, #tpu.memory_space<vmem>>, vector<32x192xbf16>
    %c0_1 = arith.constant 0 : index
    %c0_2 = arith.constant 0 : index
    %1 = vector.load %arg2[%c0_1, %c0_2] : memref<32x3xf32, #tpu.memory_space<vmem>>, vector<32x3xf32>
    %2 = vector.extract_strided_slice %0 {offsets = [0, 0], sizes = [32, 64], strides = [1, 1]} : vector<32x192xbf16> to vector<32x64xbf16>
    %3 = vector.extract_strided_slice %1 {offsets = [0, 0], sizes = [32, 1], strides = [1, 1]} : vector<32x3xf32> to vector<32x1xf32>
    %4 = arith.extf %2 : vector<32x64xbf16> to vector<32x64xf32>
    %5 = vector.broadcast %3 : vector<32x1xf32> to vector<32x64xf32>
    %6 = arith.mulf %4, %5 : vector<32x64xf32>
    %7 = vector.extract_strided_slice %0 {offsets = [0, 64], sizes = [32, 64], strides = [1, 1]} : vector<32x192xbf16> to vector<32x64xbf16>
    %8 = vector.extract_strided_slice %1 {offsets = [0, 1], sizes = [32, 1], strides = [1, 1]} : vector<32x3xf32> to vector<32x1xf32>
    %9 = arith.extf %7 : vector<32x64xbf16> to vector<32x64xf32>
    %10 = vector.broadcast %8 : vector<32x1xf32> to vector<32x64xf32>
    %11 = arith.mulf %9, %10 : vector<32x64xf32>
    %12 = arith.addf %6, %11 : vector<32x64xf32>
    %13 = vector.extract_strided_slice %0 {offsets = [0, 128], sizes = [32, 64], strides = [1, 1]} : vector<32x192xbf16> to vector<32x64xbf16>
    %14 = vector.extract_strided_slice %1 {offsets = [0, 2], sizes = [32, 1], strides = [1, 1]} : vector<32x3xf32> to vector<32x1xf32>
    %15 = arith.extf %13 : vector<32x64xbf16> to vector<32x64xf32>
    %16 = vector.broadcast %14 : vector<32x1xf32> to vector<32x64xf32>
    %17 = arith.mulf %15, %16 : vector<32x64xf32>
    %18 = arith.addf %12, %17 : vector<32x64xf32>
    %19 = arith.truncf %18 : vector<32x64xf32> to vector<32x64xbf16>
    %c0_3 = arith.constant 0 : index
    %c0_4 = arith.constant 0 : index
    %20 = vector.load %arg4[%c0_3, %c0_4] : memref<64x64xbf16, #tpu.memory_space<vmem>>, vector<64x64xbf16>
    %cst = arith.constant dense<0.000000e+00> : vector<32x64xf32>
    %21 = tpu.matmul %19, %20, %cst {dimension_numbers = #tpu.dot_dimension_numbers<[1], [0], [0], [1], [0, 0, 1, 1], [], []>} : vector<32x64xbf16>, vector<64x64xbf16>, vector<32x64xf32> -> vector<32x64xf32>
    %c0_5 = arith.constant 0 : index
    %c0_6 = arith.constant 0 : index
    %22 = vector.load %arg3[%c0_5, %c0_6] : memref<32x32xbf16, #tpu.memory_space<vmem>>, vector<32x32xbf16>
    %c0_7 = arith.constant 0 : index
    %c0_8 = arith.constant 0 : index
    %23 = vector.load %arg5[%c0_7, %c0_8] : memref<32x64xbf16, #tpu.memory_space<vmem>>, vector<32x64xbf16>
    %cst_9 = arith.constant dense<0.000000e+00> : vector<32x64xf32>
    %24 = tpu.matmul %22, %23, %cst_9 {dimension_numbers = #tpu.dot_dimension_numbers<[1], [0], [0], [1], [0, 0, 1, 1], [], []>} : vector<32x32xbf16>, vector<32x64xbf16>, vector<32x64xf32> -> vector<32x64xf32>
    %25 = arith.addf %21, %24 : vector<32x64xf32>
    %c0_10 = arith.constant 0 : index
    %c0_11 = arith.constant 0 : index
    %26 = vector.load %arg6[%c0_10, %c0_11] : memref<1x64xf32, #tpu.memory_space<vmem>>, vector<1x64xf32>
    %27 = vector.broadcast %26 : vector<1x64xf32> to vector<32x64xf32>
    %28 = arith.addf %25, %27 : vector<32x64xf32>
    %cst_12 = arith.constant 0.000000e+00 : f32
    %29 = vector.broadcast %cst_12 : f32 to vector<32x64xf32>
    %30 = arith.maximumf %28, %29 : vector<32x64xf32>
    %c0_13 = arith.constant 0 : index
    %c0_14 = arith.constant 0 : index
    %31 = vector.load %arg7[%c0_13, %c0_14] : memref<64x64xbf16, #tpu.memory_space<vmem>>, vector<64x64xbf16>
    %c0_15 = arith.constant 0 : index
    %c0_16 = arith.constant 0 : index
    %32 = vector.load %arg8[%c0_15, %c0_16] : memref<1x64xf32, #tpu.memory_space<vmem>>, vector<1x64xf32>
    %33 = arith.truncf %30 : vector<32x64xf32> to vector<32x64xbf16>
    %cst_17 = arith.constant dense<0.000000e+00> : vector<32x64xf32>
    %34 = tpu.matmul %33, %31, %cst_17 {dimension_numbers = #tpu.dot_dimension_numbers<[1], [0], [0], [1], [0, 0, 1, 1], [], []>} : vector<32x64xbf16>, vector<64x64xbf16>, vector<32x64xf32> -> vector<32x64xf32>
    %35 = vector.broadcast %32 : vector<1x64xf32> to vector<32x64xf32>
    %36 = arith.addf %34, %35 : vector<32x64xf32>
    %cst_18 = arith.constant 0.000000e+00 : f32
    %37 = vector.broadcast %cst_18 : f32 to vector<32x64xf32>
    %38 = arith.maximumf %36, %37 : vector<32x64xf32>
    %39 = arith.truncf %38 : vector<32x64xf32> to vector<32x64xbf16>
    %c0_19 = arith.constant 0 : index
    %c0_20 = arith.constant 0 : index
    %40 = vector.load %arg9[%c0_19, %c0_20] : memref<32x64xbf16, #tpu.memory_space<vmem>>, vector<32x64xbf16>
    tpu.vector_store %arg9[%c0_19, %c0_20], %39 {strides = array<i32>} : memref<32x64xbf16, #tpu.memory_space<vmem>>, vector<32x64xbf16>,
    return
  }
  func.func @transform_0(%arg0: i32) -> (i32, i32) {
    %c0_i32 = arith.constant 0 : i32
    %c0_i32_0 = arith.constant 0 : i32
    return %arg0, %c0_i32 : i32, i32
  }
  func.func @transform_1(%arg0: i32) -> (i32, i32) {
    %c0_i32 = arith.constant 0 : i32
    %c0_i32_0 = arith.constant 0 : i32
    return %arg0, %c0_i32 : i32, i32
  }
  func.func @transform_2(%arg0: i32) -> (i32, i32) {
    %c0_i32 = arith.constant 0 : i32
    %c0_i32_0 = arith.constant 0 : i32
    return %arg0, %c0_i32 : i32, i32
  }
  func.func @transform_3(%arg0: i32) -> (i32, i32) {
    %c0_i32 = arith.constant 0 : i32
    %c0_i32_0 = arith.constant 0 : i32
    %c0_i32_1 = arith.constant 0 : i32
    return %c0_i32, %c0_i32_0 : i32, i32
  }
  func.func @transform_4(%arg0: i32) -> (i32, i32) {
    %c0_i32 = arith.constant 0 : i32
    %c0_i32_0 = arith.constant 0 : i32
    %c0_i32_1 = arith.constant 0 : i32
    return %c0_i32, %c0_i32_0 : i32, i32
  }
  func.func @transform_5(%arg0: i32) -> (i32, i32) {
    %c0_i32 = arith.constant 0 : i32
    %c0_i32_0 = arith.constant 0 : i32
    %c0_i32_1 = arith.constant 0 : i32
    return %c0_i32, %c0_i32_0 : i32, i32
  }
  func.func @transform_6(%arg0: i32) -> (i32, i32) {
    %c0_i32 = arith.constant 0 : i32
    %c0_i32_0 = arith.constant 0 : i32
    %c0_i32_1 = arith.constant 0 : i32
    return %c0_i32, %c0_i32_0 : i32, i32
  }
  func.func @transform_7(%arg0: i32) -> (i32, i32) {
    %c0_i32 = arith.constant 0 : i32
    %c0_i32_0 = arith.constant 0 : i32
    %c0_i32_1 = arith.constant 0 : i32
    return %c0_i32, %c0_i32_0 : i32, i32
  }
  func.func @transform_8(%arg0: i32) -> (i32, i32) {
    %c0_i32 = arith.constant 0 : i32
    %c0_i32_0 = arith.constant 0 : i32
    return %arg0, %c0_i32 : i32, i32
  }
}

module attributes {stable_mosaic.version = 11 : i64} {
  func.func @kernel(%arg0: i32, %arg1: memref<64x192xbf16, #tpu.memory_space<vmem>>, %arg2: memref<64x3xf32, #tpu.memory_space<vmem>>, %arg3: memref<64x4xbf16, #tpu.memory_space<vmem>>, %arg4: memref<64x32xbf16, #tpu.memory_space<vmem>>, %arg5: memref<4x32xbf16, #tpu.memory_space<vmem>>, %arg6: memref<1x32xf32, #tpu.memory_space<vmem>>, %arg7: memref<32x32xbf16, #tpu.memory_space<vmem>>, %arg8: memref<1x32xf32, #tpu.memory_space<vmem>>, %arg9: memref<64x32xf32, #tpu.memory_space<vmem>>) attributes {dimension_semantics = [#tpu.dimension_semantics<parallel>], iteration_bounds = array<i64: 2>, scalar_prefetch = 0 : i64, scratch_operands = 0 : i64, tpu.core_type = #tpu.core_type<tc>, window_params = [{transform_indices = @transform_0, window_bounds = array<i64: 64, 192>}, {transform_indices = @transform_1, window_bounds = array<i64: 64, 3>}, {transform_indices = @transform_2, window_bounds = array<i64: 64, 4>}, {pipeline_mode = #tpu.pipeline_mode<synchronous>, transform_indices = @transform_3, window_bounds = array<i64: 64, 32>}, {pipeline_mode = #tpu.pipeline_mode<synchronous>, transform_indices = @transform_4, window_bounds = array<i64: 4, 32>}, {pipeline_mode = #tpu.pipeline_mode<synchronous>, transform_indices = @transform_5, window_bounds = array<i64: 1, 32>}, {pipeline_mode = #tpu.pipeline_mode<synchronous>, transform_indices = @transform_6, window_bounds = array<i64: 32, 32>}, {pipeline_mode = #tpu.pipeline_mode<synchronous>, transform_indices = @transform_7, window_bounds = array<i64: 1, 32>}, {transform_indices = @transform_8, window_bounds = array<i64: 64, 32>}]} {
    %c0 = arith.constant 0 : index
    %c0_0 = arith.constant 0 : index
    %0 = vector.load %arg1[%c0, %c0_0] : memref<64x192xbf16, #tpu.memory_space<vmem>>, vector<64x192xbf16>
    %c0_1 = arith.constant 0 : index
    %c0_2 = arith.constant 0 : index
    %1 = vector.load %arg2[%c0_1, %c0_2] : memref<64x3xf32, #tpu.memory_space<vmem>>, vector<64x3xf32>
    %2 = vector.extract_strided_slice %0 {offsets = [0, 0], sizes = [64, 64], strides = [1, 1]} : vector<64x192xbf16> to vector<64x64xbf16>
    %3 = vector.extract_strided_slice %1 {offsets = [0, 0], sizes = [64, 1], strides = [1, 1]} : vector<64x3xf32> to vector<64x1xf32>
    %4 = arith.extf %2 : vector<64x64xbf16> to vector<64x64xf32>
    %5 = vector.broadcast %3 : vector<64x1xf32> to vector<64x64xf32>
    %6 = arith.mulf %4, %5 : vector<64x64xf32>
    %7 = vector.extract_strided_slice %0 {offsets = [0, 64], sizes = [64, 64], strides = [1, 1]} : vector<64x192xbf16> to vector<64x64xbf16>
    %8 = vector.extract_strided_slice %1 {offsets = [0, 1], sizes = [64, 1], strides = [1, 1]} : vector<64x3xf32> to vector<64x1xf32>
    %9 = arith.extf %7 : vector<64x64xbf16> to vector<64x64xf32>
    %10 = vector.broadcast %8 : vector<64x1xf32> to vector<64x64xf32>
    %11 = arith.mulf %9, %10 : vector<64x64xf32>
    %12 = arith.addf %6, %11 : vector<64x64xf32>
    %13 = vector.extract_strided_slice %0 {offsets = [0, 128], sizes = [64, 64], strides = [1, 1]} : vector<64x192xbf16> to vector<64x64xbf16>
    %14 = vector.extract_strided_slice %1 {offsets = [0, 2], sizes = [64, 1], strides = [1, 1]} : vector<64x3xf32> to vector<64x1xf32>
    %15 = arith.extf %13 : vector<64x64xbf16> to vector<64x64xf32>
    %16 = vector.broadcast %14 : vector<64x1xf32> to vector<64x64xf32>
    %17 = arith.mulf %15, %16 : vector<64x64xf32>
    %18 = arith.addf %12, %17 : vector<64x64xf32>
    %19 = arith.truncf %18 : vector<64x64xf32> to vector<64x64xbf16>
    %c0_3 = arith.constant 0 : index
    %c0_4 = arith.constant 0 : index
    %20 = vector.load %arg4[%c0_3, %c0_4] : memref<64x32xbf16, #tpu.memory_space<vmem>>, vector<64x32xbf16>
    %cst = arith.constant dense<0.000000e+00> : vector<64x32xf32>
    %21 = tpu.matmul %19, %20, %cst {dimension_numbers = #tpu.dot_dimension_numbers<[1], [0], [0], [1], [0, 0, 1, 1], [], []>} : vector<64x64xbf16>, vector<64x32xbf16>, vector<64x32xf32> -> vector<64x32xf32>
    %c0_5 = arith.constant 0 : index
    %c0_6 = arith.constant 0 : index
    %22 = vector.load %arg3[%c0_5, %c0_6] : memref<64x4xbf16, #tpu.memory_space<vmem>>, vector<64x4xbf16>
    %c0_7 = arith.constant 0 : index
    %c0_8 = arith.constant 0 : index
    %23 = vector.load %arg5[%c0_7, %c0_8] : memref<4x32xbf16, #tpu.memory_space<vmem>>, vector<4x32xbf16>
    %cst_9 = arith.constant dense<0.000000e+00> : vector<64x32xf32>
    %24 = tpu.matmul %22, %23, %cst_9 {dimension_numbers = #tpu.dot_dimension_numbers<[1], [0], [0], [1], [0, 0, 1, 1], [], []>} : vector<64x4xbf16>, vector<4x32xbf16>, vector<64x32xf32> -> vector<64x32xf32>
    %25 = arith.addf %21, %24 : vector<64x32xf32>
    %c0_10 = arith.constant 0 : index
    %c0_11 = arith.constant 0 : index
    %26 = vector.load %arg6[%c0_10, %c0_11] : memref<1x32xf32, #tpu.memory_space<vmem>>, vector<1x32xf32>
    %27 = vector.broadcast %26 : vector<1x32xf32> to vector<64x32xf32>
    %28 = arith.addf %25, %27 : vector<64x32xf32>
    %cst_12 = arith.constant 0.000000e+00 : f32
    %29 = vector.broadcast %cst_12 : f32 to vector<64x32xf32>
    %30 = arith.maximumf %28, %29 : vector<64x32xf32>
    %c0_13 = arith.constant 0 : index
    %c0_14 = arith.constant 0 : index
    %31 = vector.load %arg7[%c0_13, %c0_14] : memref<32x32xbf16, #tpu.memory_space<vmem>>, vector<32x32xbf16>
    %c0_15 = arith.constant 0 : index
    %c0_16 = arith.constant 0 : index
    %32 = vector.load %arg8[%c0_15, %c0_16] : memref<1x32xf32, #tpu.memory_space<vmem>>, vector<1x32xf32>
    %33 = arith.truncf %30 : vector<64x32xf32> to vector<64x32xbf16>
    %cst_17 = arith.constant dense<0.000000e+00> : vector<64x32xf32>
    %34 = tpu.matmul %33, %31, %cst_17 {dimension_numbers = #tpu.dot_dimension_numbers<[1], [0], [0], [1], [0, 0, 1, 1], [], []>} : vector<64x32xbf16>, vector<32x32xbf16>, vector<64x32xf32> -> vector<64x32xf32>
    %35 = vector.broadcast %32 : vector<1x32xf32> to vector<64x32xf32>
    %36 = arith.addf %34, %35 : vector<64x32xf32>
    %cst_18 = arith.constant 0.000000e+00 : f32
    %37 = vector.broadcast %cst_18 : f32 to vector<64x32xf32>
    %38 = arith.maximumf %36, %37 : vector<64x32xf32>
    %c0_19 = arith.constant 0 : index
    %c0_20 = arith.constant 0 : index
    %39 = vector.load %arg9[%c0_19, %c0_20] : memref<64x32xf32, #tpu.memory_space<vmem>>, vector<64x32xf32>
    tpu.vector_store %arg9[%c0_19, %c0_20], %38 {strides = array<i32>} : memref<64x32xf32, #tpu.memory_space<vmem>>, vector<64x32xf32>,
    return
  }
  func.func @transform_0(%arg0: i32) -> (i32, i32) {
    %c0_i32 = arith.constant 0 : i32
    %c0_i32_0 = arith.constant 0 : i32
    return %arg0, %c0_i32 : i32, i32
  }
  func.func @transform_1(%arg0: i32) -> (i32, i32) {
    %c0_i32 = arith.constant 0 : i32
    %c0_i32_0 = arith.constant 0 : i32
    return %arg0, %c0_i32 : i32, i32
  }
  func.func @transform_2(%arg0: i32) -> (i32, i32) {
    %c0_i32 = arith.constant 0 : i32
    %c0_i32_0 = arith.constant 0 : i32
    return %arg0, %c0_i32 : i32, i32
  }
  func.func @transform_3(%arg0: i32) -> (i32, i32) {
    %c0_i32 = arith.constant 0 : i32
    %c0_i32_0 = arith.constant 0 : i32
    %c0_i32_1 = arith.constant 0 : i32
    return %c0_i32, %c0_i32_0 : i32, i32
  }
  func.func @transform_4(%arg0: i32) -> (i32, i32) {
    %c0_i32 = arith.constant 0 : i32
    %c0_i32_0 = arith.constant 0 : i32
    %c0_i32_1 = arith.constant 0 : i32
    return %c0_i32, %c0_i32_0 : i32, i32
  }
  func.func @transform_5(%arg0: i32) -> (i32, i32) {
    %c0_i32 = arith.constant 0 : i32
    %c0_i32_0 = arith.constant 0 : i32
    %c0_i32_1 = arith.constant 0 : i32
    return %c0_i32, %c0_i32_0 : i32, i32
  }
  func.func @transform_6(%arg0: i32) -> (i32, i32) {
    %c0_i32 = arith.constant 0 : i32
    %c0_i32_0 = arith.constant 0 : i32
    %c0_i32_1 = arith.constant 0 : i32
    return %c0_i32, %c0_i32_0 : i32, i32
  }
  func.func @transform_7(%arg0: i32) -> (i32, i32) {
    %c0_i32 = arith.constant 0 : i32
    %c0_i32_0 = arith.constant 0 : i32
    %c0_i32_1 = arith.constant 0 : i32
    return %c0_i32, %c0_i32_0 : i32, i32
  }
  func.func @transform_8(%arg0: i32) -> (i32, i32) {
    %c0_i32 = arith.constant 0 : i32
    %c0_i32_0 = arith.constant 0 : i32
    return %arg0, %c0_i32 : i32, i32
  }
}

</mosaic_0001>

<bundles_post_ra>
// kernel: _lambda_.5
= control target key start
LH: loop header
LB: loop body
LE: loop exit
PB: predicated region body
PF: predicated region fallthrough
CT: control target
= control target key end

     0   :  { %vm92_vm0 = vcmask 1043456   ;;  %vm79_vm1 = vcmask 326656   ;;  %vm157_vm2 = vcmask 261120   ;;  %vm280_vm3 = vcmask 523264   ;;  %s552_s1 = inlined_call_operand.vmem [shape: bf16[40,32], index: 1, kind: input, shape index: {}]   ;;  %s553_s2 = inlined_call_operand.vmem [shape: f32[1,32], index: 2, kind: input, shape index: {}]   ;;  %s554_s0 = inlined_call_operand.vmem [shape: bf16[64,40], index: 0, kind: input, shape index: {}]   ;;  %s555_s4 = inlined_call_operand.vmem [shape: f32[1,32], index: 4, kind: input, shape index: {}]   ;;  %s556_s3 = inlined_call_operand.vmem [shape: bf16[32,32], index: 3, kind: input, shape index: {}]   ;;  %s557_s6 = inlined_call_operand.vmem [shape: f32[1,64], index: 6, kind: input, shape index: {}]   ;;  %s558_s5 = inlined_call_operand.vmem [shape: bf16[32,64], index: 5, kind: input, shape index: {}]   ;;  %s559_s7 = inlined_call_operand.vmem [shape: bf16[8,64], index: 7, kind: output, shape index: {}]  }
   0x1   :  { %v39_v0 = vld [vmem:[%s552_s1 + $0x10] sm:$0xf]  ;;  %v440_v4 = vld [vmem:[%s552_s1 + $0x8] sm:$0xff]  ;;  %v439_v5 = vld [vmem:[%s552_s1] sm:$0xff]  ;;  %vm361_vm4 = vcmask 1041409   ;;  %vm363_vm5 = vcmask 1042434  }
   0x2   :  { %v73_v1 = vunpack.c.l.b16 %v39_v0  ;;  %v435_v6 = vld [vmem:[%s554_s0] sm:$0xff]  ;;  %v436_v7 = vld [vmem:[%s554_s0 + $0x8] sm:$0xff]  ;;  %v437_v8 = vld [vmem:[%s554_s0 + $0x10] sm:$0xff]  ;;  %vm365_vm6 = vcmask 1043459   ;;  %vm367_vm7 = vcmask 1044484   ;;  %vm369_vm8 = vcmask 1045509  }
   0x3   :  { %v438_v9 = vld [vmem:[%s554_s0 + $0x18] sm:$0xff]  ;;  %v442_v10 = vld [vmem:[%s556_s3 + $0x8] sm:$0xff]  ;;  %v441_v11 = vld [vmem:[%s556_s3] sm:$0xff]  ;;  %vm371_vm9 = vcmask 1046534   ;;  %vm373_vm10 = vcmask 1047559   ;;  %vm377_vm11 = vcmask 519168  }
   0x4   :  { %v76_v2 = vpack.c.b16 %v73_v1, %v73_v1  ;;  %176 = vmatpush.bf16.msra.mxu1 %v442_v10  ;;  %v448_v13 = vld [vmem:[%s553_s2] ss:$0 sm:$0xff]  ;;  %v444_v41 = vld [vmem:[%s558_s5 + $0x8] sm:$0xff] }
   0x5   :  { %249 = vmatpush.bf16.msra.mxu2 %v444_v41  ;;  %v443_v42 = vld [vmem:[%s558_s5] sm:$0xff] }
   0x6   :  { %v94_v3 = vsel %vm92_vm0, %v76_v2, 0  ;;  %v449_v44 = vld [vmem:[%s555_s4] ss:$0 sm:$0xff] }
   0x7   :  { %101 = vmatpush.bf16.msra.mxu0 %v94_v3  ;;  %445 = vmatpush.bf16.msra.mxu3 %v94_v3 }
   0x8   :  { %177 = vmatpush.bf16.msra.mxu1 %v441_v11 }
   0x9   :  { %250 = vmatpush.bf16.msra.mxu2 %v443_v42 }
   0xb   :  { %102 = vmatpush.bf16.msra.mxu0 %v440_v4  ;;  %446 = vmatpush.bf16.msra.mxu3 %v440_v4 }
   0xf   :  { %103 = vmatpush.bf16.msra.mxu0 %v439_v5  ;;  %447 = vmatpush.bf16.msra.mxu3 %v439_v5 }
  0x12   :  { %407 = vmatmul.msk.bf16.vlgmr.msra.gmra.mxu0 %vm79_vm1, %v435_v6  ;;  %408 = vmatmul.msk.bf16.vlgmr.msra.gmra.mxu3 %vm79_vm1, %v436_v7 }
  0x22   :  { %409 = vmatmul.msk.bf16.gmra.mxu3 %vm79_vm1, %v437_v8 }
  0x32   :  { %410 = vmatmul.msk.bf16.gmra.mxu3 %vm79_vm1, %v438_v9 }
  0x8f   :  { %v105_v12 = vpop.f32.mrf.mxu0 }
  0x90   :  { %v106_v15 = vadd.f32 %v448_v13, %v105_v12  ;;  %v450_v12 = vld [vmem:[%s557_s6] ss:$0 sm:$0xff] }
  0x92   :  { %v125_v18 = vmax.f32 %v106_v15, 0.0 }
  0x95   :  { %v110_v14 = vpop.f32.mrf.mxu3 }
  0x96   :  { %v111_v22 = vadd.f32 %v448_v13, %v110_v14 }
  0x97   :  { %v107_v16 = vpop.f32.mrf.mxu0 }
  0x98   :  { %v108_v17 = vadd.f32 %v448_v13, %v107_v16  ;;  %v127_v25 = vmax.f32 %v111_v22, 0.0 }
  0x9a   :  { %v126_v19 = vmax.f32 %v108_v17, 0.0 }
  0x9c   :  { %v138_v20 = vpack.c.bf16 %v126_v19, %v125_v18 }
  0x9d   :  { %v112_v21 = vpop.f32.mrf.mxu3 }
  0x9e   :  { %419 = vmatmul.msk.bf16.vlgmr.msra.gmra.mxu1 %vm157_vm2, %v138_v20  ;;  %v113_v23 = vadd.f32 %v448_v13, %v112_v21 }
  0xa0   :  { %v128_v26 = vmax.f32 %v113_v23, 0.0 }
  0xa2   :  { %v139_v27 = vpack.c.bf16 %v128_v26, %v127_v25 }
  0xa5   :  { %v115_v24 = vpop.f32.mrf.mxu3 }
  0xa6   :  { %v116_v29 = vadd.f32 %v448_v13, %v115_v24 }
  0xa8   :  { %v129_v32 = vmax.f32 %v116_v29, 0.0 }
  0xad   :  { %v117_v28 = vpop.f32.mrf.mxu3 }
  0xae   :  { %420 = vmatmul.msk.bf16.gmra.mxu1 %vm157_vm2, %v139_v27  ;;  %v118_v30 = vadd.f32 %v448_v13, %v117_v28 }
  0xb0   :  { %v130_v33 = vmax.f32 %v118_v30, 0.0 }
  0xb2   :  { %v140_v34 = vpack.c.bf16 %v130_v33, %v129_v32 }
  0xb5   :  { %v120_v31 = vpop.f32.mrf.mxu3 }
  0xb6   :  { %v121_v36 = vadd.f32 %v448_v13, %v120_v31 }
  0xb8   :  { %v131_v38 = vmax.f32 %v121_v36, 0.0 }
  0xbd   :  { %v122_v35 = vpop.f32.mrf.mxu3 }
  0xbe   :  { %421 = vmatmul.msk.bf16.gmra.mxu1 %vm157_vm2, %v140_v34  ;;  %v123_v37 = vadd.f32 %v448_v13, %v122_v35 }
  0xc0   :  { %v132_v39 = vmax.f32 %v123_v37, 0.0 }
  0xc2   :  { %v141_v40 = vpack.c.bf16 %v132_v39, %v131_v38 }
  0xce   :  { %422 = vmatmul.msk.bf16.gmra.mxu1 %vm157_vm2, %v141_v40 }
 0x11b   :  { %v179_v43 = vpop.f32.mrf.mxu1 }
 0x11c   :  { %v180_v45 = vadd.f32 %v449_v44, %v179_v43 }
 0x11e   :  { %v199_v48 = vmax.f32 %v180_v45, 0.0 }
 0x123   :  { %v181_v46 = vpop.f32.mrf.mxu1 }
 0x124   :  { %v182_v47 = vadd.f32 %v449_v44, %v181_v46 }
 0x126   :  { %v200_v49 = vmax.f32 %v182_v47, 0.0 }
 0x128   :  { %v212_v50 = vpack.c.bf16 %v200_v49, %v199_v48 }
 0x12a   :  { %431 = vmatmul.msk.bf16.vlgmr.msra.gmra.mxu2 %vm157_vm2, %v212_v50 }
 0x12b   :  { %v184_v51 = vpop.f32.mrf.mxu1 }
 0x12c   :  { %v185_v52 = vadd.f32 %v449_v44, %v184_v51 }
 0x12e   :  { %v201_v55 = vmax.f32 %v185_v52, 0.0 }
 0x133   :  { %v186_v53 = vpop.f32.mrf.mxu1 }
 0x134   :  { %v187_v54 = vadd.f32 %v449_v44, %v186_v53 }
 0x136   :  { %v202_v56 = vmax.f32 %v187_v54, 0.0 }
 0x138   :  { %v213_v57 = vpack.c.bf16 %v202_v56, %v201_v55 }
 0x13a   :  { %432 = vmatmul.msk.bf16.gmra.mxu2 %vm157_vm2, %v213_v57 }
 0x13b   :  { %v189_v58 = vpop.f32.mrf.mxu1 }
 0x13c   :  { %v190_v59 = vadd.f32 %v449_v44, %v189_v58 }
 0x13e   :  { %v203_v62 = vmax.f32 %v190_v59, 0.0 }
 0x143   :  { %v191_v60 = vpop.f32.mrf.mxu1 }
 0x144   :  { %v192_v61 = vadd.f32 %v449_v44, %v191_v60 }
 0x146   :  { %v204_v63 = vmax.f32 %v192_v61, 0.0 }
 0x148   :  { %v214_v0 = vpack.c.bf16 %v204_v63, %v203_v62 }
 0x14a   :  { %433 = vmatmul.msk.bf16.gmra.mxu2 %vm157_vm2, %v214_v0 }
 0x14b   :  { %v194_v1 = vpop.f32.mrf.mxu1 }
 0x14c   :  { %v195_v2 = vadd.f32 %v449_v44, %v194_v1 }
 0x14e   :  { %v205_v5 = vmax.f32 %v195_v2, 0.0 }
 0x153   :  { %v196_v3 = vpop.f32.mrf.mxu1 }
 0x154   :  { %v197_v4 = vadd.f32 %v449_v44, %v196_v3 }
 0x156   :  { %v206_v6 = vmax.f32 %v197_v4, 0.0 }
 0x158   :  { %v215_v7 = vpack.c.bf16 %v206_v6, %v205_v5 }
 0x15a   :  { %434 = vmatmul.msk.bf16.gmra.mxu2 %vm157_vm2, %v215_v7 }
 0x1ad   :  { %v252_v8 = vpop.f32.mrf.mxu2 }
 0x1ae   :  { %v253_v15 = vadd.f32 %v450_v12, %v252_v8 }
 0x1b0   :  { %v272_v21 = vmax.f32 %v253_v15, 0.0 }
 0x1b2   :  { %v281_v26 = vsel %vm280_vm3, %v272_v21, -inf }
 0x1b3   :  { %v282_v33 = vrot.slane %v281_v26, 4 }
 0x1b5   :  { %v254_v9 = vpop.f32.mrf.mxu2  ;;  %v283_v40 = vmax.f32 %v281_v26, %v282_v33 }
 0x1b6   :  { %v255_v13 = vadd.f32 %v450_v12, %v254_v9 }
 0x1b7   :  { %v284_v49 = vrot.slane %v283_v40, 2 }
 0x1b8   :  { %v273_v18 = vmax.f32 %v255_v13, 0.0 }
 0x1b9   :  { %v285_v57 = vmax.f32 %v283_v40, %v284_v49 }
 0x1ba   :  { %v288_v24 = vsel %vm280_vm3, %v273_v18, -inf }
 0x1bb   :  { %v289_v28 = vrot.slane %v288_v24, 4  ;;  %v286_v3 = vrot.slane %v285_v57, 1 }
 0x1bd   :  { %v257_v10 = vpop.f32.mrf.mxu2  ;;  %v290_v37 = vmax.f32 %v288_v24, %v289_v28 }
 0x1be   :  { %v258_v14 = vadd.f32 %v450_v12, %v257_v10 }
 0x1bf   :  { %v291_v44 = vrot.slane %v290_v37, 2 }
 0x1c0   :  { %v274_v20 = vmax.f32 %v258_v14, 0.0  ;;  %v287_v14 = vmax.f32 %v285_v57, %v286_v3 }
 0x1c1   :  { %v292_v53 = vmax.f32 %v290_v37, %v291_v44 }
 0x1c2   :  { %v295_v25 = vsel %vm280_vm3, %v274_v20, -inf }
 0x1c3   :  { %v296_v31 = vrot.slane %v295_v25, 4  ;;  %v293_v61 = vrot.slane %v292_v53, 1 }
 0x1c5   :  { %v259_v11 = vpop.f32.mrf.mxu2  ;;  %v297_v38 = vmax.f32 %v295_v25, %v296_v31  ;;  %v294_v8 = vmax.f32 %v292_v53, %v293_v61 }
 0x1c6   :  { %v260_v16 = vadd.f32 %v450_v12, %v259_v11 }
 0x1c7   :  { %v298_v47 = vrot.slane %v297_v38, 2 }
 0x1c8   :  { %v275_v22 = vmax.f32 %v260_v16, 0.0 }
 0x1c9   :  { %v299_v55 = vmax.f32 %v297_v38, %v298_v47 }
 0x1ca   :  { %v302_v27 = vsel %vm280_vm3, %v275_v22, -inf }
 0x1cb   :  { %v303_v34 = vrot.slane %v302_v27, 4  ;;  %v300_v1 = vrot.slane %v299_v55, 1 }
 0x1cd   :  { %v262_v17 = vpop.f32.mrf.mxu2  ;;  %v304_v41 = vmax.f32 %v302_v27, %v303_v34  ;;  %v301_v11 = vmax.f32 %v299_v55, %v300_v1 }
 0x1ce   :  { %v263_v19 = vadd.f32 %v450_v12, %v262_v17 }
 0x1cf   :  { %v305_v50 = vrot.slane %v304_v41, 2 }
 0x1d0   :  { %v276_v23 = vmax.f32 %v263_v19, 0.0  ;;  %v338_v19 = vpack.c.bf16 %v294_v8, %v294_v8 }
 0x1d1   :  { %v306_v58 = vmax.f32 %v304_v41, %v305_v50 }
 0x1d2   :  { %v309_v29 = vsel %vm280_vm3, %v276_v23, -inf  ;;  %v337_v23 = vpack.c.bf16 %v287_v14, %v287_v14  ;;  %v354_v27 = vunpack.c.l.b16 %v338_v19 }
 0x1d3   :  { %v310_v35 = vrot.slane %v309_v29, 4  ;;  %v307_v4 = vrot.slane %v306_v58, 1 }
 0x1d5   :  { %v264_v30 = vpop.f32.mrf.mxu2  ;;  %v311_v43 = vmax.f32 %v309_v29, %v310_v35  ;;  %v308_v15 = vmax.f32 %v306_v58, %v307_v4 }
 0x1d6   :  { %v265_v32 = vadd.f32 %v450_v12, %v264_v30 }
 0x1d7   :  { %v312_v51 = vrot.slane %v311_v43, 2  ;;  %v340_v24 = vpack.c.bf16 %v308_v15, %v308_v15 }
 0x1d8   :  { %v277_v36 = vmax.f32 %v265_v32, 0.0  ;;  %v353_v32 = vunpack.c.l.b16 %v337_v23 }
 0x1d9   :  { %v313_v60 = vmax.f32 %v311_v43, %v312_v51  ;;  %v356_v33 = vunpack.c.l.b16 %v340_v24 }
 0x1da   :  { %v316_v39 = vsel %vm280_vm3, %v277_v36, -inf  ;;  %v362_v36 = vsel %vm361_vm4, %v354_v27, %v353_v32 }
 0x1db   :  { %v317_v42 = vrot.slane %v316_v39, 4  ;;  %v314_v6 = vrot.slane %v313_v60, 1 }
 0x1dd   :  { %v318_v45 = vmax.f32 %v316_v39, %v317_v42  ;;  %v267_v46 = vpop.f32.mrf.mxu2  ;;  %v315_v18 = vmax.f32 %v313_v60, %v314_v6 }
 0x1de   :  { %v268_v48 = vadd.f32 %v450_v12, %v267_v46 }
 0x1df   :  { %v319_v54 = vrot.slane %v318_v45, 2  ;;  %v341_v26 = vpack.c.bf16 %v315_v18, %v315_v18 }
 0x1e0   :  { %v278_v52 = vmax.f32 %v268_v48, 0.0 }
 0x1e1   :  { %v320_v62 = vmax.f32 %v318_v45, %v319_v54  ;;  %v357_v35 = vunpack.c.l.b16 %v341_v26 }
 0x1e2   :  { %v323_v56 = vsel %vm280_vm3, %v278_v52, -inf }
 0x1e3   :  { %v324_v59 = vrot.slane %v323_v56, 4  ;;  %v321_v9 = vrot.slane %v320_v62, 1 }
 0x1e5   :  { %v325_v63 = vmax.f32 %v323_v56, %v324_v59  ;;  %v269_v0 = vpop.f32.mrf.mxu2  ;;  %v322_v20 = vmax.f32 %v320_v62, %v321_v9 }
 0x1e6   :  { %v270_v2 = vadd.f32 %v450_v12, %v269_v0  ;;  %v339_v12 = vpack.c.bf16 %v301_v11, %v301_v11 }
 0x1e7   :  { %v326_v5 = vrot.slane %v325_v63, 2  ;;  %v342_v28 = vpack.c.bf16 %v322_v20, %v322_v20 }
 0x1e8   :  { %v279_v7 = vmax.f32 %v270_v2, 0.0  ;;  %v355_v30 = vunpack.c.l.b16 %v339_v12 }
 0x1e9   :  { %v327_v10 = vmax.f32 %v325_v63, %v326_v5  ;;  %v358_v37 = vunpack.c.l.b16 %v342_v28 }
 0x1ea   :  { %v330_v13 = vsel %vm280_vm3, %v279_v7, -inf  ;;  %v364_v39 = vsel %vm363_vm5, %v355_v30, %v362_v36 }
 0x1eb   :  { %v328_v16 = vrot.slane %v327_v10, 1  ;;  %v331_v17 = vrot.slane %v330_v13, 4  ;;  %v366_v41 = vsel %vm365_vm6, %v356_v33, %v364_v39 }
 0x1ec   :  { %v368_v43 = vsel %vm367_vm7, %v357_v35, %v366_v41 }
 0x1ed   :  { %v332_v21 = vmax.f32 %v330_v13, %v331_v17  ;;  %v329_v22 = vmax.f32 %v327_v10, %v328_v16  ;;  %v370_v44 = vsel %vm369_vm8, %v358_v37, %v368_v43 }
 0x1ef   :  { %v333_v25 = vrot.slane %v332_v21, 2  ;;  %v343_v31 = vpack.c.bf16 %v329_v22, %v329_v22 }
 0x1f1   :  { %v334_v29 = vmax.f32 %v332_v21, %v333_v25  ;;  %v359_v40 = vunpack.c.l.b16 %v343_v31 }
 0x1f3   :  { %v335_v34 = vrot.slane %v334_v29, 1  ;;  %v372_v46 = vsel %vm371_vm9, %v359_v40, %v370_v44 }
 0x1f5   :  { %v336_v38 = vmax.f32 %v334_v29, %v335_v34 }
 0x1f7   :  { %v344_v42 = vpack.c.bf16 %v336_v38, %v336_v38 }
 0x1f9   :  { %v360_v45 = vunpack.c.l.b16 %v344_v42 }
 0x1fb   :  { %v374_v47 = vsel %vm373_vm10, %v360_v45, %v372_v46 }
 0x1fc   :  { %v375_v48 = vpack.c.b16 %v374_v47, %v374_v47 }
 0x1fe   :  { %378 = vst.msk [vmem:[%s559_s7] sm:$0xf] %vm377_vm11, %v375_v48 }

// kernel: _lambda_.6
= control target key start
LH: loop header
LB: loop body
LE: loop exit
PB: predicated region body
PF: predicated region fallthrough
CT: control target
= control target key end

     0   :  { %v438_v0 = vmov 1   ;;  %v439_v3 = vmov 0   ;;  %v440_v6 = vmov 2   ;;  %s441_s18 = smov 64   ;;  %vm186_vm0 = vcmask 261120   ;;  %s585_s1 = inlined_call_operand.vmem [shape: f32[32,3], index: 1, kind: input, shape index: {}]   ;;  %s586_s0 = inlined_call_operand.vmem [shape: bf16[32,192], index: 0, kind: input, shape index: {}]   ;;  %s587_s3 = inlined_call_operand.vmem [shape: bf16[64,64], index: 3, kind: input, shape index: {}]   ;;  %s588_s4 = inlined_call_operand.vmem [shape: bf16[32,64], index: 4, kind: input, shape index: {}]   ;;  %s589_s2 = inlined_call_operand.vmem [shape: bf16[32,32], index: 2, kind: input, shape index: {}]   ;;  %s590_s5 = inlined_call_operand.vmem [shape: f32[1,64], index: 5, kind: input, shape index: {}]   ;;  %s591_s7 = inlined_call_operand.vmem [shape: f32[1,64], index: 7, kind: input, shape index: {}]   ;;  %s592_s6 = inlined_call_operand.vmem [shape: bf16[64,64], index: 6, kind: input, shape index: {}]   ;;  %s593_s8 = inlined_call_operand.vmem [shape: bf16[32,64], index: 8, kind: output, shape index: {}]  }
   0x1   :  { %428 = vset.pattern.permute.xlu0 %v438_v0  ;;  %v34_v1 = vld [vmem:[%s585_s1] sm:$0xff]  ;;  %429 = vset.pattern.permute.xlu1 %v438_v0  ;;  %v36_v2 = vld [vmem:[%s585_s1 + $0x10] sm:$0xff]  ;;  %v35_v4 = vld [vmem:[%s585_s1 + $0x8] sm:$0xff]  ;;  %vm236_vm1 = vcmask 523264   ;;  %vm345_vm2 = vcmask 519168  }
   0x2   :  { %67 = vperm.xlu0 %428, %v34_v1   ;;  %75 = vperm.xlu1 %429, %v36_v2   ;;  %v37_v5 = vld [vmem:[%s585_s1 + $0x18] sm:$0xff]  ;;  %v30_v7 = vld [vmem:[%s586_s0] sm:$0xff]  ;;  %v31_v12 = vld [vmem:[%s586_s0 + $0x8] sm:$0xff] }
   0x3   :  { %430 = vset.pattern.permute.xlu2 %v439_v3  ;;  %v38_v8 = vunpack.c.l.bf16 %v30_v7  ;;  %v508_v13 = vld [vmem:[%s586_s0 + $0x18] sm:$0xff]  ;;  %v39_v14 = vunpack.c.l.bf16 %v31_v12  ;;  %v514_v16 = vld [vmem:[%s586_s0 + $0x10] sm:$0xff]  ;;  %v415_v25 = vld [vmem:[%s588_s4 + $0x8] sm:$0xff]  ;;  %v110_v32 = vrot.slane %v30_v7, 4  ;;  %v111_v41 = vrot.slane %v31_v12, 4 }
   0x4   :  { %44 = vperm.xlu2 %430, %v34_v1   ;;  %v41_v15 = vunpack.c.l.bf16 %v508_v13  ;;  %v40_v21 = vunpack.c.l.bf16 %v514_v16  ;;  %v411_v23 = vld [vmem:[%s587_s3 + $0x18] sm:$0xff]  ;;  %v410_v24 = vld [vmem:[%s587_s3 + $0x10] sm:$0xff]  ;;  %v409_v26 = vld [vmem:[%s587_s3 + $0x8] sm:$0xff]  ;;  %199 = vmatpush.bf16.msra.mxu0 %v415_v25  ;;  %v112_v52 = vrot.slane %v514_v16, 4  ;;  %v113_v54 = vrot.slane %v508_v13, 4 }
   0x5   :  { %247 = vmatpush.bf16.msra.mxu1 %v411_v23  ;;  %420 = vmatpush.bf16.msra.mxu3 %v411_v23  ;;  %v414_v27 = vld [vmem:[%s588_s4] sm:$0xff]  ;;  %v118_v33 = vunpack.c.l.bf16 %v110_v32  ;;  %v413_v34 = vld [vmem:[%s589_s2 + $0x8] sm:$0xff]  ;;  %v119_v43 = vunpack.c.l.bf16 %v111_v41 }
   0x6   :  { %v408_v29 = vld [vmem:[%s587_s3] sm:$0xff]  ;;  %v120_v55 = vunpack.c.l.bf16 %v112_v52  ;;  %v121_v59 = vunpack.c.l.bf16 %v113_v54  ;;  %v417_v7 = vld [vmem:[%s592_s6 + $0x8] sm:$0xff] }
   0x7   :  { %v412_v30 = vld [vmem:[%s589_s2] sm:$0xff] }
   0x8   :  { %200 = vmatpush.bf16.msra.mxu0 %v414_v27  ;;  %v436_v12 = vld [vmem:[%s590_s5] ss:$0 sm:$0xff] }
   0x9   :  { %248 = vmatpush.bf16.msra.mxu1 %v410_v24  ;;  %421 = vmatpush.bf16.msra.mxu3 %v410_v24  ;;  %v437_v32 = vld [vmem:[%s591_s7] ss:$0 sm:$0xff] }
   0xa   :  { %71 = vperm.xlu0 %428, %v35_v4   ;;  %79 = vperm.xlu1 %429, %v37_v5  }
   0xb   :  { %370 = vmatmul.msk.bf16.vlgmr.msra.gmra.mxu0 %vm186_vm0, %v412_v30 }
   0xc   :  { %49 = vperm.xlu2 %430, %v35_v4  }
   0xd   :  { %249 = vmatpush.bf16.msra.mxu1 %v409_v26  ;;  %422 = vmatpush.bf16.msra.mxu3 %v409_v26 }
  0x11   :  { %250 = vmatpush.bf16.msra.mxu1 %v408_v29  ;;  %423 = vmatpush.bf16.msra.mxu3 %v408_v29 }
  0x12   :  { %433 = vset.pattern.permute.xlu1 %v439_v3  ;;  %432 = vset.pattern.permute.xlu0 %v440_v6 }
  0x13   :  { %54 = vperm.xlu1 %433, %v36_v2  }
  0x14   :  { %431 = vset.pattern.permute.xlu2 %v440_v6 }
  0x15   :  { %123 = vperm.xlu2 %431, %v34_v1  }
  0x1b   :  { %435 = vset.pattern.permute.xlu1 %v440_v6  ;;  %371 = vmatmul.msk.bf16.gmra.mxu0 %vm186_vm0, %v413_v34  ;;  %v418_v6 = vld [vmem:[%s592_s6 + $0x10] sm:$0xff] }
  0x1d   :  { %434 = vset.pattern.permute.xlu2 %v439_v3 }
  0x1e   :  { %59 = vperm.xlu2 %434, %v37_v5  }
  0x5e   :  { %v45_v28 = vpop.permute.xlu2 %44 }
  0x5f   :  { %v62_v37 = vmul.f32 %v45_v28, %v38_v8 }
  0x66   :  { %v50_v31 = vpop.permute.xlu2 %49 }
  0x67   :  { %v63_v44 = vmul.f32 %v50_v31, %v39_v14 }
  0x6f   :  { %v124_v35 = vpop.permute.xlu2 %123 }
  0x70   :  { %v138_v38 = vmul.f32 %v124_v35, %v118_v33 }
  0x74   :  { %v68_v9 = vpop.permute.xlu0 %67  ;;  %v76_v10 = vpop.permute.xlu1 %75 }
  0x75   :  { %v82_v11 = vmul.f32 %v68_v9, %v38_v8  ;;  %v84_v22 = vmul.f32 %v76_v10, %v40_v21  ;;  %v416_v8 = vld [vmem:[%s592_s6] sm:$0xff] }
  0x77   :  { %90 = vrot.lane.b32.xlu0 %v82_v11, %s441_s18 }
  0x78   :  { %v60_v50 = vpop.permute.xlu2 %59 }
  0x79   :  { %v65_v57 = vmul.f32 %v60_v50, %v41_v15 }
  0x7c   :  { %v72_v17 = vpop.permute.xlu0 %71  ;;  %v80_v18 = vpop.permute.xlu1 %79 }
  0x7d   :  { %v83_v19 = vmul.f32 %v72_v17, %v39_v14  ;;  %v85_v20 = vmul.f32 %v80_v18, %v41_v15 }
  0x7f   :  { %92 = vrot.lane.b32.xlu1 %v83_v19, %s441_s18  ;;  %127 = vperm.xlu0 %432, %v35_v4  }
  0x80   :  { %96 = vrot.lane.b32.xlu2 %v85_v20, %s441_s18 }
  0x85   :  { %v55_v36 = vpop.permute.xlu1 %54 }
  0x86   :  { %v64_v58 = vmul.f32 %v55_v36, %v40_v21 }
  0x87   :  { %94 = vrot.lane.b32.xlu1 %v84_v22, %s441_s18  ;;  %131 = vperm.xlu0 %432, %v36_v2  }
  0x88   :  { %v202_v9 = vpop.f32.mrf.mxu0 }
  0x8f   :  { %135 = vperm.xlu1 %435, %v37_v5   ;;  %v419_v5 = vld [vmem:[%s592_s6 + $0x18] sm:$0xff] }
  0x90   :  { %322 = vmatpush.bf16.msra.mxu2 %v419_v5  ;;  %v204_v13 = vpop.f32.mrf.mxu0 }
  0x94   :  { %323 = vmatpush.bf16.msra.mxu2 %v418_v6 }
  0x98   :  { %324 = vmatpush.bf16.msra.mxu2 %v417_v7  ;;  %v207_v21 = vpop.f32.mrf.mxu0 }
  0x9c   :  { %325 = vmatpush.bf16.msra.mxu2 %v416_v8 }
  0xa0   :  { %v209_v24 = vpop.f32.mrf.mxu0 }
  0xda   :  { %v97_v60 = vpop.permute.xlu2 %96 }
  0xdb   :  { %v105_v0 = vadd.f32 %v97_v60, %v65_v57 }
  0xe9   :  { %v91_v39 = vpop.permute.xlu0 %90 }
  0xea   :  { %v102_v40 = vadd.f32 %v91_v39, %v62_v37 }
  0xec   :  { %v142_v42 = vadd.f32 %v138_v38, %v102_v40 }
  0xf1   :  { %v93_v45 = vpop.permute.xlu1 %92  ;;  %v128_v46 = vpop.permute.xlu0 %127 }
  0xf2   :  { %v103_v47 = vadd.f32 %v93_v45, %v63_v44  ;;  %v139_v48 = vmul.f32 %v128_v46, %v119_v43 }
  0xf4   :  { %v143_v49 = vadd.f32 %v139_v48, %v103_v47 }
  0xf6   :  { %v146_v51 = vpack.c.bf16 %v143_v49, %v142_v42 }
  0xf8   :  { %388 = vmatmul.msk.bf16.vlgmr.msra.gmra.mxu1 %vm236_vm1, %v146_v51 }
  0xf9   :  { %v95_v53 = vpop.permute.xlu1 %94  ;;  %v132_v56 = vpop.permute.xlu0 %131 }
  0xfa   :  { %v104_v61 = vadd.f32 %v95_v53, %v64_v58  ;;  %v140_v62 = vmul.f32 %v132_v56, %v120_v55 }
  0xfc   :  { %v144_v2 = vadd.f32 %v140_v62, %v104_v61 }
 0x101   :  { %v136_v63 = vpop.permute.xlu1 %135 }
 0x102   :  { %v141_v1 = vmul.f32 %v136_v63, %v121_v59 }
 0x104   :  { %v145_v3 = vadd.f32 %v141_v1, %v105_v0 }
 0x106   :  { %v147_v4 = vpack.c.bf16 %v145_v3, %v144_v2 }
 0x108   :  { %389 = vmatmul.msk.bf16.vlgmr.msra.gmra.mxu3 %vm236_vm1, %v147_v4 }
 0x175   :  { %v252_v10 = vpop.f32.mrf.mxu1 }
 0x176   :  { %v253_v11 = vadd.f32 %v252_v10, %v202_v9 }
 0x178   :  { %v266_v15 = vadd.f32 %v436_v12, %v253_v11 }
 0x17a   :  { %v270_v18 = vmax.f32 %v266_v15, 0.0 }
 0x17d   :  { %v254_v14 = vpop.f32.mrf.mxu1 }
 0x17e   :  { %v255_v16 = vadd.f32 %v254_v14, %v204_v13 }
 0x180   :  { %v267_v17 = vadd.f32 %v436_v12, %v255_v16 }
 0x182   :  { %v271_v19 = vmax.f32 %v267_v17, 0.0 }
 0x184   :  { %v283_v20 = vpack.c.bf16 %v271_v19, %v270_v18 }
 0x186   :  { %406 = vmatmul.msk.bf16.vlgmr.msra.gmra.mxu2 %vm236_vm1, %v283_v20 }
 0x18b   :  { %v257_v22 = vpop.f32.mrf.mxu3 }
 0x18c   :  { %v258_v23 = vadd.f32 %v257_v22, %v207_v21 }
 0x18e   :  { %v268_v26 = vadd.f32 %v436_v12, %v258_v23 }
 0x190   :  { %v272_v29 = vmax.f32 %v268_v26, 0.0 }
 0x193   :  { %v259_v25 = vpop.f32.mrf.mxu3 }
 0x194   :  { %v260_v27 = vadd.f32 %v259_v25, %v209_v24 }
 0x196   :  { %v269_v28 = vadd.f32 %v436_v12, %v260_v27 }
 0x198   :  { %v273_v30 = vmax.f32 %v269_v28, 0.0 }
 0x19a   :  { %v284_v31 = vpack.c.bf16 %v273_v30, %v272_v29 }
 0x19c   :  { %407 = vmatmul.msk.bf16.gmra.mxu2 %vm236_vm1, %v284_v31 }
 0x209   :  { %v327_v33 = vpop.f32.mrf.mxu2 }
 0x20a   :  { %v328_v34 = vadd.f32 %v437_v32, %v327_v33 }
 0x20c   :  { %v337_v35 = vmax.f32 %v328_v34, 0.0 }
 0x20e   :  { %v341_v36 = vpack.c.bf16 %v337_v35, %v337_v35 }
 0x210   :  { %346 = vst.msk [vmem:[%s593_s8] sm:$0xf] %vm345_vm2, %v341_v36 }
 0x211   :  { %v329_v37 = vpop.f32.mrf.mxu2 }
 0x212   :  { %v330_v38 = vadd.f32 %v437_v32, %v329_v37 }
 0x214   :  { %v338_v39 = vmax.f32 %v330_v38, 0.0 }
 0x216   :  { %v342_v40 = vpack.c.bf16 %v338_v39, %v338_v39 }
 0x218   :  { %347 = vst.msk [vmem:[%s593_s8 + $0x4] sm:$0xf] %vm345_vm2, %v342_v40 }
 0x21f   :  { %v332_v41 = vpop.f32.mrf.mxu2 }
 0x220   :  { %v333_v42 = vadd.f32 %v437_v32, %v332_v41 }
 0x222   :  { %v339_v43 = vmax.f32 %v333_v42, 0.0 }
 0x224   :  { %v343_v44 = vpack.c.bf16 %v339_v43, %v339_v43 }
 0x226   :  { %348 = vst.msk [vmem:[%s593_s8 + $0x8] sm:$0xf] %vm345_vm2, %v343_v44 }
 0x227   :  { %v334_v45 = vpop.f32.mrf.mxu2 }
 0x228   :  { %v335_v46 = vadd.f32 %v437_v32, %v334_v45 }
 0x22a   :  { %v340_v47 = vmax.f32 %v335_v46, 0.0 }
 0x22c   :  { %v344_v48 = vpack.c.bf16 %v340_v47, %v340_v47 }
 0x22e   :  { %349 = vst.msk [vmem:[%s593_s8 + $0xc] sm:$0xf] %vm345_vm2, %v344_v48 }

// kernel: _lambda_.4
= control target key start
LH: loop header
LB: loop body
LE: loop exit
PB: predicated region body
PF: predicated region fallthrough
CT: control target
= control target key end

     0   :  { %vm193_vm0 = vcmask 1043456   ;;  %vm144_vm1 = vcmask 64512   ;;  %vm346_vm2 = vcmask 130048   ;;  %vm713_vm3 = vcmask 261120   ;;  %s1577_s1 = inlined_call_operand.vmem [shape: bf16[8,16], index: 1, kind: input, shape index: {}]   ;;  %s1578_s0 = inlined_call_operand.vmem [shape: bf16[256,8], index: 0, kind: input, shape index: {}]   ;;  %s1579_s2 = inlined_call_operand.vmem [shape: f32[1,16], index: 2, kind: input, shape index: {}]   ;;  %s1580_s3 = inlined_call_operand.vmem [shape: bf16[16,16], index: 3, kind: input, shape index: {}]   ;;  %s1581_s4 = inlined_call_operand.vmem [shape: f32[1,16], index: 4, kind: input, shape index: {}]   ;;  %s1582_s5 = inlined_call_operand.vmem [shape: bf16[16,32], index: 5, kind: input, shape index: {}]   ;;  %s1583_s6 = inlined_call_operand.vmem [shape: f32[1,32], index: 6, kind: input, shape index: {}]   ;;  %s1584_s7 = inlined_call_operand.vmem [shape: bf16[32,32], index: 7, kind: output, shape index: {}]  }
   0x1   :  { %v59_v0 = vld [vmem:[%s1577_s1] sm:$0xf]  ;;  %v1207_v4 = vld [vmem:[%s1578_s0 + $0x8] sm:$0xff]  ;;  %v1208_v6 = vld [vmem:[%s1578_s0 + $0x10] sm:$0xff]  ;;  %vm1034_vm4 = vcmask 1041409   ;;  %vm1036_vm5 = vcmask 1042434  }
   0x2   :  { %v195_v1 = vsel %vm193_vm0, %v59_v0, 0  ;;  %v1206_v2 = vld [vmem:[%s1578_s0] sm:$0xff]  ;;  %v1219_v5 = vld [vmem:[%s1578_s0 + $0x68] sm:$0xff]  ;;  %v1220_v7 = vld [vmem:[%s1578_s0 + $0x70] sm:$0xff]  ;;  %vm1038_vm6 = vcmask 1043459   ;;  %vm1040_vm7 = vcmask 1044484  }
   0x3   :  { %204 = vmatpush.bf16.msra.mxu0 %v195_v1  ;;  %1224 = vmatpush.bf16.msra.mxu3 %v195_v1  ;;  %v1218_v3 = vld [vmem:[%s1578_s0 + $0x60] sm:$0xff]  ;;  %v1209_v8 = vld [vmem:[%s1578_s0 + $0x18] sm:$0xff]  ;;  %v1211_v11 = vld [vmem:[%s1578_s0 + $0x28] sm:$0xff]  ;;  %vm1042_vm8 = vcmask 1045509   ;;  %vm1044_vm9 = vcmask 1046534   ;;  %vm1046_vm10 = vcmask 1047559  }
   0x4   :  { %v1221_v9 = vld [vmem:[%s1578_s0 + $0x78] sm:$0xff]  ;;  %v1210_v10 = vld [vmem:[%s1578_s0 + $0x20] sm:$0xff]  ;;  %v1212_v12 = vld [vmem:[%s1578_s0 + $0x30] sm:$0xff]  ;;  %vm1077_vm11 = vcmask 257024  }
   0x5   :  { %v1222_v13 = vld [vmem:[%s1580_s3] sm:$0xff]  ;;  %v1213_v14 = vld [vmem:[%s1578_s0 + $0x38] sm:$0xff]  ;;  %v1215_v24 = vld [vmem:[%s1578_s0 + $0x48] sm:$0xff] }
   0x6   :  { %1150 = vmatmul.msk.bf16.vlgmr.msra.gmra.mxu0 %vm144_vm1, %v1206_v2  ;;  %1162 = vmatmul.msk.bf16.vlgmr.msra.gmra.mxu3 %vm144_vm1, %v1218_v3  ;;  %v1214_v15 = vld [vmem:[%s1578_s0 + $0x40] sm:$0xff]  ;;  %v1216_v38 = vld [vmem:[%s1578_s0 + $0x50] sm:$0xff]  ;;  %v1217_v53 = vld [vmem:[%s1578_s0 + $0x58] sm:$0xff] }
   0x7   :  { %402 = vmatpush.bf16.msra.mxu1 %v1222_v13  ;;  %1225 = vmatpush.bf16.msrb.mxu3 %v1222_v13  ;;  %v1330_v17 = vld [vmem:[%s1579_s2] ss:$0 sm:$0xff] }
  0x16   :  { %1151 = vmatmul.msk.bf16.gmra.mxu0 %vm144_vm1, %v1207_v4  ;;  %1163 = vmatmul.msk.bf16.gmra.mxu3 %vm144_vm1, %v1219_v5 }
  0x26   :  { %1152 = vmatmul.msk.bf16.gmra.mxu0 %vm144_vm1, %v1208_v6  ;;  %1164 = vmatmul.msk.bf16.gmra.mxu3 %vm144_vm1, %v1220_v7 }
  0x36   :  { %1153 = vmatmul.msk.bf16.gmra.mxu0 %vm144_vm1, %v1209_v8  ;;  %1165 = vmatmul.msk.bf16.gmra.mxu3 %vm144_vm1, %v1221_v9 }
  0x46   :  { %1154 = vmatmul.msk.bf16.gmra.mxu0 %vm144_vm1, %v1210_v10 }
  0x56   :  { %1155 = vmatmul.msk.bf16.gmra.mxu0 %vm144_vm1, %v1211_v11 }
  0x66   :  { %1156 = vmatmul.msk.bf16.gmra.mxu0 %vm144_vm1, %v1212_v12 }
  0x76   :  { %1157 = vmatmul.msk.bf16.gmra.mxu0 %vm144_vm1, %v1213_v14 }
  0x83   :  { %v206_v16 = vpop.f32.mrf.mxu0 }
  0x84   :  { %v207_v18 = vadd.f32 %v1330_v17, %v206_v16 }
  0x86   :  { %1158 = vmatmul.msk.bf16.gmra.mxu0 %vm144_vm1, %v1214_v15  ;;  %v286_v21 = vmax.f32 %v207_v18, 0.0 }
  0x89   :  { %v266_v26 = vpop.f32.mrf.mxu3 }
  0x8a   :  { %v267_v28 = vadd.f32 %v1330_v17, %v266_v26 }
  0x8b   :  { %v208_v19 = vpop.f32.mrf.mxu0 }
  0x8c   :  { %v209_v20 = vadd.f32 %v1330_v17, %v208_v19  ;;  %v310_v34 = vmax.f32 %v267_v28, 0.0 }
  0x8e   :  { %v287_v22 = vmax.f32 %v209_v20, 0.0 }
  0x90   :  { %v321_v23 = vpack.c.bf16 %v287_v22, %v286_v21 }
  0x91   :  { %v268_v31 = vpop.f32.mrf.mxu3 }
  0x92   :  { %1170 = vmatmul.msk.bf16.vlgmr.msra.gmra.mxu1 %vm346_vm2, %v321_v23  ;;  %v269_v35 = vadd.f32 %v1330_v17, %v268_v31 }
  0x93   :  { %v211_v25 = vpop.f32.mrf.mxu0 }
  0x94   :  { %v212_v27 = vadd.f32 %v1330_v17, %v211_v25  ;;  %v311_v37 = vmax.f32 %v269_v35, 0.0  ;;  %v1223_v35 = vld [vmem:[%s1582_s5] sm:$0xff] }
  0x95   :  { %599 = vmatpush.bf16.msra.mxu2 %v1223_v35  ;;  %1226 = vmatpush.bf16.msra.mxu3 %v1223_v35 }
  0x96   :  { %1159 = vmatmul.msk.bf16.gmra.mxu0 %vm144_vm1, %v1215_v24  ;;  %v288_v32 = vmax.f32 %v212_v27, 0.0  ;;  %v333_v39 = vpack.c.bf16 %v311_v37, %v310_v34 }
  0x98   :  { %1182 = vmatmul.msk.bf16.vlgmr.msrb.gmra.mxu3 %vm346_vm2, %v333_v39 }
  0x99   :  { %v271_v41 = vpop.f32.mrf.mxu3 }
  0x9a   :  { %v272_v43 = vadd.f32 %v1330_v17, %v271_v41 }
  0x9b   :  { %v213_v29 = vpop.f32.mrf.mxu0 }
  0x9c   :  { %v214_v30 = vadd.f32 %v1330_v17, %v213_v29  ;;  %v312_v49 = vmax.f32 %v272_v43, 0.0 }
  0x9e   :  { %v289_v33 = vmax.f32 %v214_v30, 0.0 }
  0xa0   :  { %v322_v36 = vpack.c.bf16 %v289_v33, %v288_v32 }
  0xa1   :  { %v273_v46 = vpop.f32.mrf.mxu3 }
  0xa2   :  { %1171 = vmatmul.msk.bf16.gmra.mxu1 %vm346_vm2, %v322_v36  ;;  %v274_v50 = vadd.f32 %v1330_v17, %v273_v46 }
  0xa3   :  { %v216_v40 = vpop.f32.mrf.mxu0 }
  0xa4   :  { %v217_v42 = vadd.f32 %v1330_v17, %v216_v40  ;;  %v313_v52 = vmax.f32 %v274_v50, 0.0  ;;  %v1389_v50 = vld [vmem:[%s1581_s4] ss:$0 sm:$0xff] }
  0xa6   :  { %1160 = vmatmul.msk.bf16.gmra.mxu0 %vm144_vm1, %v1216_v38  ;;  %v290_v47 = vmax.f32 %v217_v42, 0.0  ;;  %v334_v54 = vpack.c.bf16 %v313_v52, %v312_v49 }
  0xa8   :  { %1183 = vmatmul.msk.bf16.gmra.mxu3 %vm346_vm2, %v334_v54 }
  0xa9   :  { %v276_v56 = vpop.f32.mrf.mxu3 }
  0xaa   :  { %v277_v58 = vadd.f32 %v1330_v17, %v276_v56 }
  0xab   :  { %v218_v44 = vpop.f32.mrf.mxu0 }
  0xac   :  { %v219_v45 = vadd.f32 %v1330_v17, %v218_v44  ;;  %v314_v0 = vmax.f32 %v277_v58, 0.0 }
  0xae   :  { %v291_v48 = vmax.f32 %v219_v45, 0.0 }
  0xb0   :  { %v323_v51 = vpack.c.bf16 %v291_v48, %v290_v47 }
  0xb1   :  { %v278_v61 = vpop.f32.mrf.mxu3 }
  0xb2   :  { %1172 = vmatmul.msk.bf16.gmra.mxu1 %vm346_vm2, %v323_v51  ;;  %v279_v1 = vadd.f32 %v1330_v17, %v278_v61 }
  0xb3   :  { %v221_v55 = vpop.f32.mrf.mxu0 }
  0xb4   :  { %v222_v57 = vadd.f32 %v1330_v17, %v221_v55  ;;  %v315_v3 = vmax.f32 %v279_v1, 0.0 }
  0xb6   :  { %1161 = vmatmul.msk.bf16.gmra.mxu0 %vm144_vm1, %v1217_v53  ;;  %v292_v62 = vmax.f32 %v222_v57, 0.0  ;;  %v335_v4 = vpack.c.bf16 %v315_v3, %v314_v0 }
  0xb8   :  { %1184 = vmatmul.msk.bf16.gmra.mxu3 %vm346_vm2, %v335_v4 }
  0xb9   :  { %v281_v6 = vpop.f32.mrf.mxu3 }
  0xba   :  { %v282_v8 = vadd.f32 %v1330_v17, %v281_v6 }
  0xbb   :  { %v223_v59 = vpop.f32.mrf.mxu0 }
  0xbc   :  { %v224_v60 = vadd.f32 %v1330_v17, %v223_v59  ;;  %v316_v14 = vmax.f32 %v282_v8, 0.0 }
  0xbe   :  { %v293_v63 = vmax.f32 %v224_v60, 0.0 }
  0xc0   :  { %v324_v2 = vpack.c.bf16 %v293_v63, %v292_v62 }
  0xc1   :  { %v283_v11 = vpop.f32.mrf.mxu3 }
  0xc2   :  { %1173 = vmatmul.msk.bf16.gmra.mxu1 %vm346_vm2, %v324_v2  ;;  %v284_v15 = vadd.f32 %v1330_v17, %v283_v11 }
  0xc3   :  { %v226_v5 = vpop.f32.mrf.mxu0 }
  0xc4   :  { %v227_v7 = vadd.f32 %v1330_v17, %v226_v5  ;;  %v317_v18 = vmax.f32 %v284_v15, 0.0 }
  0xc6   :  { %v294_v12 = vmax.f32 %v227_v7, 0.0  ;;  %v336_v19 = vpack.c.bf16 %v317_v18, %v316_v14 }
  0xc8   :  { %1185 = vmatmul.msk.bf16.gmra.mxu3 %vm346_vm2, %v336_v19 }
  0xcb   :  { %v228_v9 = vpop.f32.mrf.mxu0 }
  0xcc   :  { %v229_v10 = vadd.f32 %v1330_v17, %v228_v9 }
  0xce   :  { %v295_v13 = vmax.f32 %v229_v10, 0.0 }
  0xd0   :  { %v325_v16 = vpack.c.bf16 %v295_v13, %v294_v12 }
  0xd2   :  { %1174 = vmatmul.msk.bf16.gmra.mxu1 %vm346_vm2, %v325_v16 }
  0xd3   :  { %v231_v20 = vpop.f32.mrf.mxu0 }
  0xd4   :  { %v232_v21 = vadd.f32 %v1330_v17, %v231_v20 }
  0xd6   :  { %v296_v24 = vmax.f32 %v232_v21, 0.0 }
  0xdb   :  { %v233_v22 = vpop.f32.mrf.mxu0 }
  0xdc   :  { %v234_v23 = vadd.f32 %v1330_v17, %v233_v22 }
  0xde   :  { %v297_v25 = vmax.f32 %v234_v23, 0.0 }
  0xe0   :  { %v326_v26 = vpack.c.bf16 %v297_v25, %v296_v24 }
  0xe2   :  { %1175 = vmatmul.msk.bf16.gmra.mxu1 %vm346_vm2, %v326_v26 }
  0xe3   :  { %v236_v27 = vpop.f32.mrf.mxu0 }
  0xe4   :  { %v237_v28 = vadd.f32 %v1330_v17, %v236_v27 }
  0xe6   :  { %v298_v31 = vmax.f32 %v237_v28, 0.0 }
  0xeb   :  { %v238_v29 = vpop.f32.mrf.mxu0 }
  0xec   :  { %v239_v30 = vadd.f32 %v1330_v17, %v238_v29 }
  0xee   :  { %v299_v32 = vmax.f32 %v239_v30, 0.0 }
  0xf0   :  { %v327_v33 = vpack.c.bf16 %v299_v32, %v298_v31 }
  0xf2   :  { %1176 = vmatmul.msk.bf16.gmra.mxu1 %vm346_vm2, %v327_v33 }
  0xf3   :  { %v241_v34 = vpop.f32.mrf.mxu0 }
  0xf4   :  { %v242_v36 = vadd.f32 %v1330_v17, %v241_v34 }
  0xf6   :  { %v300_v39 = vmax.f32 %v242_v36, 0.0 }
  0xfb   :  { %v243_v37 = vpop.f32.mrf.mxu0 }
  0xfc   :  { %v244_v38 = vadd.f32 %v1330_v17, %v243_v37 }
  0xfe   :  { %v301_v40 = vmax.f32 %v244_v38, 0.0 }
 0x100   :  { %v328_v41 = vpack.c.bf16 %v301_v40, %v300_v39 }
 0x102   :  { %1177 = vmatmul.msk.bf16.gmra.mxu1 %vm346_vm2, %v328_v41 }
 0x103   :  { %v246_v42 = vpop.f32.mrf.mxu0 }
 0x104   :  { %v247_v43 = vadd.f32 %v1330_v17, %v246_v42 }
 0x106   :  { %v302_v46 = vmax.f32 %v247_v43, 0.0 }
 0x10b   :  { %v248_v44 = vpop.f32.mrf.mxu0 }
 0x10c   :  { %v249_v45 = vadd.f32 %v1330_v17, %v248_v44 }
 0x10e   :  { %v303_v47 = vmax.f32 %v249_v45, 0.0 }
 0x10f   :  { %v404_v48 = vpop.f32.mrf.mxu1 }
 0x110   :  { %v329_v49 = vpack.c.bf16 %v303_v47, %v302_v46  ;;  %v405_v52 = vadd.f32 %v1389_v50, %v404_v48 }
 0x112   :  { %1178 = vmatmul.msk.bf16.gmra.mxu1 %vm346_vm2, %v329_v49  ;;  %v484_v55 = vmax.f32 %v405_v52, 0.0 }
 0x113   :  { %v251_v51 = vpop.f32.mrf.mxu0 }
 0x114   :  { %v252_v56 = vadd.f32 %v1330_v17, %v251_v51 }
 0x116   :  { %v304_v61 = vmax.f32 %v252_v56, 0.0 }
 0x117   :  { %v406_v53 = vpop.f32.mrf.mxu1 }
 0x118   :  { %v407_v54 = vadd.f32 %v1389_v50, %v406_v53 }
 0x11a   :  { %v485_v57 = vmax.f32 %v407_v54, 0.0 }
 0x11b   :  { %v253_v58 = vpop.f32.mrf.mxu0  ;;  %v464_v4 = vpop.f32.mrf.mxu3 }
 0x11c   :  { %v519_v59 = vpack.c.bf16 %v485_v57, %v484_v55  ;;  %v254_v60 = vadd.f32 %v1330_v17, %v253_v58  ;;  %v465_v12 = vadd.f32 %v1389_v50, %v464_v4 }
 0x11e   :  { %v305_v62 = vmax.f32 %v254_v60, 0.0  ;;  %1190 = vmatmul.msk.bf16.vlgmr.msra.gmra.mxu2 %vm346_vm2, %v519_v59  ;;  %v508_v19 = vmax.f32 %v465_v12, 0.0 }
 0x11f   :  { %v409_v63 = vpop.f32.mrf.mxu1 }
 0x120   :  { %v330_v0 = vpack.c.bf16 %v305_v62, %v304_v61  ;;  %v410_v2 = vadd.f32 %v1389_v50, %v409_v63 }
 0x122   :  { %1179 = vmatmul.msk.bf16.gmra.mxu1 %vm346_vm2, %v330_v0  ;;  %v486_v6 = vmax.f32 %v410_v2, 0.0 }
 0x123   :  { %v256_v1 = vpop.f32.mrf.mxu0  ;;  %v466_v16 = vpop.f32.mrf.mxu3 }
 0x124   :  { %v257_v7 = vadd.f32 %v1330_v17, %v256_v1  ;;  %v467_v20 = vadd.f32 %v1389_v50, %v466_v16 }
 0x126   :  { %v306_v13 = vmax.f32 %v257_v7, 0.0  ;;  %v509_v21 = vmax.f32 %v467_v20, 0.0 }
 0x127   :  { %v411_v3 = vpop.f32.mrf.mxu1 }
 0x128   :  { %v412_v5 = vadd.f32 %v1389_v50, %v411_v3  ;;  %v531_v23 = vpack.c.bf16 %v509_v21, %v508_v19 }
 0x12a   :  { %v487_v8 = vmax.f32 %v412_v5, 0.0  ;;  %1202 = vmatmul.msk.bf16.vlgmr.msra.gmra.mxu3 %vm346_vm2, %v531_v23 }
 0x12b   :  { %v258_v9 = vpop.f32.mrf.mxu0  ;;  %v469_v26 = vpop.f32.mrf.mxu3 }
 0x12c   :  { %v520_v10 = vpack.c.bf16 %v487_v8, %v486_v6  ;;  %v259_v11 = vadd.f32 %v1330_v17, %v258_v9  ;;  %v470_v34 = vadd.f32 %v1389_v50, %v469_v26 }
 0x12e   :  { %v307_v14 = vmax.f32 %v259_v11, 0.0  ;;  %1191 = vmatmul.msk.bf16.gmra.mxu2 %vm346_vm2, %v520_v10  ;;  %v510_v40 = vmax.f32 %v470_v34, 0.0 }
 0x12f   :  { %v414_v15 = vpop.f32.mrf.mxu1 }
 0x130   :  { %v331_v18 = vpack.c.bf16 %v307_v14, %v306_v13  ;;  %v415_v24 = vadd.f32 %v1389_v50, %v414_v15 }
 0x132   :  { %1180 = vmatmul.msk.bf16.gmra.mxu1 %vm346_vm2, %v331_v18  ;;  %v488_v28 = vmax.f32 %v415_v24, 0.0 }
 0x133   :  { %v261_v22 = vpop.f32.mrf.mxu0  ;;  %v471_v38 = vpop.f32.mrf.mxu3 }
 0x134   :  { %v262_v29 = vadd.f32 %v1330_v17, %v261_v22  ;;  %v472_v41 = vadd.f32 %v1389_v50, %v471_v38 }
 0x136   :  { %v308_v35 = vmax.f32 %v262_v29, 0.0  ;;  %v511_v42 = vmax.f32 %v472_v41, 0.0 }
 0x137   :  { %v416_v25 = vpop.f32.mrf.mxu1 }
 0x138   :  { %v417_v27 = vadd.f32 %v1389_v50, %v416_v25  ;;  %v532_v43 = vpack.c.bf16 %v511_v42, %v510_v40 }
 0x13a   :  { %v489_v30 = vmax.f32 %v417_v27, 0.0  ;;  %1203 = vmatmul.msk.bf16.gmra.mxu3 %vm346_vm2, %v532_v43 }
 0x13b   :  { %v263_v31 = vpop.f32.mrf.mxu0  ;;  %v474_v45 = vpop.f32.mrf.mxu3 }
 0x13c   :  { %v521_v32 = vpack.c.bf16 %v489_v30, %v488_v28  ;;  %v264_v33 = vadd.f32 %v1330_v17, %v263_v31  ;;  %v475_v51 = vadd.f32 %v1389_v50, %v474_v45 }
 0x13e   :  { %v309_v36 = vmax.f32 %v264_v33, 0.0  ;;  %1192 = vmatmul.msk.bf16.gmra.mxu2 %vm346_vm2, %v521_v32  ;;  %v512_v54 = vmax.f32 %v475_v51, 0.0 }
 0x13f   :  { %v419_v37 = vpop.f32.mrf.mxu1 }
 0x140   :  { %v332_v39 = vpack.c.bf16 %v309_v36, %v308_v35  ;;  %v420_v44 = vadd.f32 %v1389_v50, %v419_v37 }
 0x142   :  { %1181 = vmatmul.msk.bf16.gmra.mxu1 %vm346_vm2, %v332_v39  ;;  %v490_v47 = vmax.f32 %v420_v44, 0.0 }
 0x143   :  { %v476_v53 = vpop.f32.mrf.mxu3 }
 0x144   :  { %v477_v55 = vadd.f32 %v1389_v50, %v476_v53 }
 0x146   :  { %v513_v56 = vmax.f32 %v477_v55, 0.0 }
 0x147   :  { %v421_v17 = vpop.f32.mrf.mxu1 }
 0x148   :  { %v422_v46 = vadd.f32 %v1389_v50, %v421_v17  ;;  %v533_v57 = vpack.c.bf16 %v513_v56, %v512_v54 }
 0x14a   :  { %v491_v48 = vmax.f32 %v422_v46, 0.0  ;;  %1204 = vmatmul.msk.bf16.gmra.mxu3 %vm346_vm2, %v533_v57 }
 0x14b   :  { %v479_v60 = vpop.f32.mrf.mxu3 }
 0x14c   :  { %v522_v49 = vpack.c.bf16 %v491_v48, %v490_v47  ;;  %v480_v1 = vadd.f32 %v1389_v50, %v479_v60 }
 0x14e   :  { %1193 = vmatmul.msk.bf16.gmra.mxu2 %vm346_vm2, %v522_v49  ;;  %v514_v4 = vmax.f32 %v480_v1, 0.0 }
 0x14f   :  { %v424_v52 = vpop.f32.mrf.mxu1 }
 0x150   :  { %v425_v58 = vadd.f32 %v1389_v50, %v424_v52  ;;  %v1448_v52 = vld [vmem:[%s1583_s6] ss:$0 sm:$0xff] }
 0x152   :  { %v492_v62 = vmax.f32 %v425_v58, 0.0 }
 0x153   :  { %v481_v3 = vpop.f32.mrf.mxu3 }
 0x154   :  { %v482_v5 = vadd.f32 %v1389_v50, %v481_v3 }
 0x156   :  { %v515_v6 = vmax.f32 %v482_v5, 0.0 }
 0x157   :  { %v426_v59 = vpop.f32.mrf.mxu1 }
 0x158   :  { %v427_v61 = vadd.f32 %v1389_v50, %v426_v59  ;;  %v534_v7 = vpack.c.bf16 %v515_v6, %v514_v4 }
 0x15a   :  { %v493_v63 = vmax.f32 %v427_v61, 0.0  ;;  %1205 = vmatmul.msk.bf16.gmra.mxu3 %vm346_vm2, %v534_v7 }
 0x15c   :  { %v523_v0 = vpack.c.bf16 %v493_v63, %v492_v62 }
 0x15e   :  { %1194 = vmatmul.msk.bf16.gmra.mxu2 %vm346_vm2, %v523_v0 }
 0x15f   :  { %v429_v2 = vpop.f32.mrf.mxu1 }
 0x160   :  { %v430_v8 = vadd.f32 %v1389_v50, %v429_v2 }
 0x162   :  { %v494_v11 = vmax.f32 %v430_v8, 0.0 }
 0x167   :  { %v431_v9 = vpop.f32.mrf.mxu1 }
 0x168   :  { %v432_v10 = vadd.f32 %v1389_v50, %v431_v9 }
 0x16a   :  { %v495_v12 = vmax.f32 %v432_v10, 0.0 }
 0x16c   :  { %v524_v13 = vpack.c.bf16 %v495_v12, %v494_v11 }
 0x16e   :  { %1195 = vmatmul.msk.bf16.gmra.mxu2 %vm346_vm2, %v524_v13 }
 0x16f   :  { %v434_v14 = vpop.f32.mrf.mxu1 }
 0x170   :  { %v435_v15 = vadd.f32 %v1389_v50, %v434_v14 }
 0x172   :  { %v496_v19 = vmax.f32 %v435_v15, 0.0 }
 0x177   :  { %v436_v16 = vpop.f32.mrf.mxu1 }
 0x178   :  { %v437_v18 = vadd.f32 %v1389_v50, %v436_v16 }
 0x17a   :  { %v497_v20 = vmax.f32 %v437_v18, 0.0 }
 0x17c   :  { %v525_v21 = vpack.c.bf16 %v497_v20, %v496_v19 }
 0x17e   :  { %1196 = vmatmul.msk.bf16.gmra.mxu2 %vm346_vm2, %v525_v21 }
 0x17f   :  { %v439_v22 = vpop.f32.mrf.mxu1 }
 0x180   :  { %v440_v23 = vadd.f32 %v1389_v50, %v439_v22 }
 0x182   :  { %v498_v26 = vmax.f32 %v440_v23, 0.0 }
 0x187   :  { %v441_v24 = vpop.f32.mrf.mxu1 }
 0x188   :  { %v442_v25 = vadd.f32 %v1389_v50, %v441_v24 }
 0x18a   :  { %v499_v27 = vmax.f32 %v442_v25, 0.0 }
 0x18c   :  { %v526_v28 = vpack.c.bf16 %v499_v27, %v498_v26 }
 0x18e   :  { %1197 = vmatmul.msk.bf16.gmra.mxu2 %vm346_vm2, %v526_v28 }
 0x18f   :  { %v444_v29 = vpop.f32.mrf.mxu1 }
 0x190   :  { %v445_v30 = vadd.f32 %v1389_v50, %v444_v29 }
 0x192   :  { %v500_v33 = vmax.f32 %v445_v30, 0.0 }
 0x197   :  { %v446_v31 = vpop.f32.mrf.mxu1 }
 0x198   :  { %v447_v32 = vadd.f32 %v1389_v50, %v446_v31 }
 0x19a   :  { %v501_v34 = vmax.f32 %v447_v32, 0.0 }
 0x19c   :  { %v527_v35 = vpack.c.bf16 %v501_v34, %v500_v33 }
 0x19e   :  { %1198 = vmatmul.msk.bf16.gmra.mxu2 %vm346_vm2, %v527_v35 }
 0x19f   :  { %v449_v36 = vpop.f32.mrf.mxu1 }
 0x1a0   :  { %v450_v38 = vadd.f32 %v1389_v50, %v449_v36 }
 0x1a1   :  { %v601_v37 = vpop.f32.mrf.mxu2 }
 0x1a2   :  { %v502_v42 = vmax.f32 %v450_v38, 0.0  ;;  %v602_v57 = vadd.f32 %v1448_v52, %v601_v37 }
 0x1a4   :  { %v681_v0 = vmax.f32 %v602_v57, 0.0 }
 0x1a6   :  { %v714_v6 = vsel %vm713_vm3, %v681_v0, -inf }
 0x1a7   :  { %v451_v39 = vpop.f32.mrf.mxu1  ;;  %v715_v13 = vrot.slane %v714_v6, 4 }
 0x1a8   :  { %v452_v40 = vadd.f32 %v1389_v50, %v451_v39 }
 0x1a9   :  { %v603_v41 = vpop.f32.mrf.mxu2  ;;  %v716_v28 = vmax.f32 %v714_v6, %v715_v13 }
 0x1aa   :  { %v503_v43 = vmax.f32 %v452_v40, 0.0  ;;  %v604_v56 = vadd.f32 %v1448_v52, %v603_v41 }
 0x1ab   :  { %v717_v37 = vrot.slane %v716_v28, 2 }
 0x1ac   :  { %v528_v44 = vpack.c.bf16 %v503_v43, %v502_v42  ;;  %v682_v61 = vmax.f32 %v604_v56, 0.0 }
 0x1ad   :  { %v661_v51 = vpop.f32.mrf.mxu3 }
 0x1ae   :  { %1199 = vmatmul.msk.bf16.gmra.mxu2 %vm346_vm2, %v528_v44  ;;  %v721_v4 = vsel %vm713_vm3, %v682_v61, -inf  ;;  %v662_v40 = vadd.f32 %v1448_v52, %v661_v51 }
 0x1af   :  { %v454_v17 = vpop.f32.mrf.mxu1  ;;  %v722_v11 = vrot.slane %v721_v4, 4 }
 0x1b0   :  { %v455_v46 = vadd.f32 %v1389_v50, %v454_v17  ;;  %v705_v44 = vmax.f32 %v662_v40, 0.0 }
 0x1b1   :  { %v606_v45 = vpop.f32.mrf.mxu2  ;;  %v723_v23 = vmax.f32 %v721_v4, %v722_v11 }
 0x1b2   :  { %v504_v53 = vmax.f32 %v455_v46, 0.0  ;;  %v607_v58 = vadd.f32 %v1448_v52, %v606_v45  ;;  %v882_v56 = vsel %vm713_vm3, %v705_v44, -inf }
 0x1b3   :  { %v724_v31 = vrot.slane %v723_v23, 2 }
 0x1b4   :  { %v683_v1 = vmax.f32 %v607_v58, 0.0 }
 0x1b5   :  { %v663_v63 = vpop.f32.mrf.mxu3  ;;  %v725_v41 = vmax.f32 %v723_v23, %v724_v31 }
 0x1b6   :  { %v728_v7 = vsel %vm713_vm3, %v683_v1, -inf  ;;  %v664_v46 = vadd.f32 %v1448_v52, %v663_v63 }
 0x1b7   :  { %v456_v47 = vpop.f32.mrf.mxu1  ;;  %v729_v14 = vrot.slane %v728_v7, 4 }
 0x1b8   :  { %v457_v48 = vadd.f32 %v1389_v50, %v456_v47  ;;  %v718_v47 = vmax.f32 %v716_v28, %v717_v37  ;;  %v706_v57 = vmax.f32 %v664_v46, 0.0 }
 0x1b9   :  { %v608_v49 = vpop.f32.mrf.mxu2  ;;  %v730_v27 = vmax.f32 %v728_v7, %v729_v14 }
 0x1ba   :  { %v505_v54 = vmax.f32 %v457_v48, 0.0  ;;  %v609_v59 = vadd.f32 %v1448_v52, %v608_v49  ;;  %v889_v1 = vsel %vm713_vm3, %v706_v57, -inf }
 0x1bb   :  { %v731_v33 = vrot.slane %v730_v27, 2  ;;  %v890_v4 = vrot.slane %v889_v1, 4 }
 0x1bc   :  { %v529_v55 = vpack.c.bf16 %v505_v54, %v504_v53  ;;  %v684_v3 = vmax.f32 %v609_v59, 0.0  ;;  %v726_v54 = vrot.slane %v725_v41, 1 }
 0x1bd   :  { %v1463_v18 = vpop.f32.mrf.mxu3  ;;  %v732_v17 = vmax.f32 %v730_v27, %v731_v33 }
 0x1be   :  { %1200 = vmatmul.msk.bf16.gmra.mxu2 %vm346_vm2, %v529_v55  ;;  %v735_v9 = vsel %vm713_vm3, %v684_v3, -inf  ;;  %v883_v3 = vrot.slane %v882_v56, 4 }
 0x1bf   :  { %v459_v60 = vpop.f32.mrf.mxu1  ;;  %v736_v19 = vrot.slane %v735_v9, 4  ;;  %v733_v58 = vrot.slane %v732_v17, 1 }
 0x1c0   :  { %v460_v8 = vadd.f32 %v1389_v50, %v459_v60 }
 0x1c1   :  { %v611_v62 = vpop.f32.mrf.mxu2  ;;  %v737_v29 = vmax.f32 %v735_v9, %v736_v19  ;;  %v891_v19 = vmax.f32 %v889_v1, %v890_v4 }
 0x1c2   :  { %v612_v2 = vadd.f32 %v1448_v52, %v611_v62  ;;  %v506_v20 = vmax.f32 %v460_v8, 0.0  ;;  %v719_v62 = vrot.slane %v718_v47, 1  ;;  %v734_v8 = vmax.f32 %v732_v17, %v733_v58 }
 0x1c3   :  { %v738_v38 = vrot.slane %v737_v29, 2  ;;  %v892_v33 = vrot.slane %v891_v19, 2 }
 0x1c4   :  { %v685_v5 = vmax.f32 %v612_v2, 0.0  ;;  %v720_v11 = vmax.f32 %v718_v47, %v719_v62  ;;  %v940_v23 = vpack.c.bf16 %v734_v8, %v734_v8 }
 0x1c5   :  { %v1468_v36 = vpop.f32.mrf.mxu3  ;;  %v739_v48 = vmax.f32 %v737_v29, %v738_v38 }
 0x1c6   :  { %v742_v15 = vsel %vm713_vm3, %v685_v5, -inf  ;;  %v727_v5 = vmax.f32 %v725_v41, %v726_v54  ;;  %v938_v28 = vpack.c.bf16 %v720_v11, %v720_v11  ;;  %v1004_v37 = vunpack.c.l.b16 %v940_v23 }
 0x1c7   :  { %v461_v10 = vpop.f32.mrf.mxu1  ;;  %v743_v24 = vrot.slane %v742_v15, 4  ;;  %v740_v0 = vrot.slane %v739_v48, 1 }
 0x1c8   :  { %v462_v12 = vadd.f32 %v1389_v50, %v461_v10  ;;  %v1002_v41 = vunpack.c.l.b16 %v938_v28 }
 0x1c9   :  { %v613_v16 = vpop.f32.mrf.mxu2  ;;  %v744_v32 = vmax.f32 %v742_v15, %v743_v24 }
 0x1ca   :  { %v507_v21 = vmax.f32 %v462_v12, 0.0  ;;  %v614_v22 = vadd.f32 %v1448_v52, %v613_v16  ;;  %v741_v12 = vmax.f32 %v739_v48, %v740_v0  ;;  %v884_v16 = vmax.f32 %v882_v56, %v883_v3 }
 0x1cb   :  { %v745_v42 = vrot.slane %v744_v32, 2 }
 0x1cc   :  { %v530_v25 = vpack.c.bf16 %v507_v21, %v506_v20  ;;  %v686_v26 = vmax.f32 %v614_v22, 0.0  ;;  %v939_v20 = vpack.c.bf16 %v727_v5, %v727_v5  ;;  %v667_v22 = vadd.f32 %v1448_v52, %v1463_v18 }
 0x1cd   :  { %v746_v55 = vmax.f32 %v744_v32, %v745_v42  ;;  %v1475_v61 = vpop.f32.mrf.mxu3  ;;  %v941_v29 = vpack.c.bf16 %v741_v12, %v741_v12  ;;  %v885_v32 = vrot.slane %v884_v16, 2 }
 0x1ce   :  { %v749_v50 = vsel %vm713_vm3, %v686_v26, -inf  ;;  %1201 = vmatmul.msk.bf16.gmra.mxu2 %vm346_vm2, %v530_v25 }
 0x1cf   :  { %v750_v30 = vrot.slane %v749_v50, 4  ;;  %v747_v6 = vrot.slane %v746_v55, 1  ;;  %v1005_v42 = vunpack.c.l.b16 %v941_v29  ;;  %v886_v17 = vmax.f32 %v884_v16, %v885_v32 }
 0x1d1   :  { %v751_v34 = vmax.f32 %v749_v50, %v750_v30  ;;  %v616_v35 = vpop.f32.mrf.mxu2  ;;  %v748_v21 = vmax.f32 %v746_v55, %v747_v6  ;;  %v707_v30 = vmax.f32 %v667_v22, 0.0  ;;  %v887_v62 = vrot.slane %v886_v17, 1 }
 0x1d2   :  { %v617_v39 = vadd.f32 %v1448_v52, %v616_v35 }
 0x1d3   :  { %v752_v45 = vrot.slane %v751_v34, 2  ;;  %v942_v35 = vpack.c.bf16 %v748_v21, %v748_v21  ;;  %v896_v18 = vsel %vm713_vm3, %v707_v30, -inf }
 0x1d4   :  { %v687_v43 = vmax.f32 %v617_v39, 0.0  ;;  %v897_v40 = vrot.slane %v896_v18, 4 }
 0x1d5   :  { %v753_v51 = vmax.f32 %v751_v34, %v752_v45  ;;  %v673_v27 = vpop.f32.mrf.mxu3  ;;  %v1003_v34 = vunpack.c.l.b16 %v939_v20  ;;  %v893_v45 = vmax.f32 %v891_v19, %v892_v33  ;;  %v1006_v48 = vunpack.c.l.b16 %v942_v35 }
 0x1d6   :  { %v756_v49 = vsel %vm713_vm3, %v687_v43, -inf  ;;  %v898_v46 = vmax.f32 %v896_v18, %v897_v40 }
 0x1d7   :  { %v757_v53 = vrot.slane %v756_v49, 4  ;;  %v754_v9 = vrot.slane %v753_v51, 1  ;;  %v1035_v47 = vsel %vm1034_vm4, %v1003_v34, %v1002_v41  ;;  %v894_v0 = vrot.slane %v893_v45, 1 }
 0x1d8   :  { %v899_v57 = vrot.slane %v898_v46, 2 }
 0x1d9   :  { %v758_v59 = vmax.f32 %v756_v49, %v757_v53  ;;  %v618_v60 = vpop.f32.mrf.mxu2  ;;  %v755_v24 = vmax.f32 %v753_v51, %v754_v9  ;;  %v669_v49 = vadd.f32 %v1448_v52, %v1468_v36  ;;  %v1037_v53 = vsel %vm1036_vm5, %v1004_v37, %v1035_v47 }
 0x1da   :  { %v619_v63 = vadd.f32 %v1448_v52, %v618_v60  ;;  %v1039_v58 = vsel %vm1038_vm6, %v1005_v42, %v1037_v53  ;;  %v888_v9 = vmax.f32 %v886_v17, %v887_v62 }
 0x1db   :  { %v759_v2 = vrot.slane %v758_v59, 2  ;;  %v943_v38 = vpack.c.bf16 %v755_v24, %v755_v24 }
 0x1dc   :  { %v688_v7 = vmax.f32 %v619_v63, 0.0  ;;  %v900_v63 = vmax.f32 %v898_v46, %v899_v57  ;;  %v962_v23 = vpack.c.bf16 %v888_v9, %v888_v9 }
 0x1dd   :  { %v760_v10 = vmax.f32 %v758_v59, %v759_v2  ;;  %v1007_v54 = vunpack.c.l.b16 %v943_v38  ;;  %v708_v59 = vmax.f32 %v669_v49, 0.0  ;;  %v676_v1 = vpop.f32.mrf.mxu3  ;;  %v1041_v2 = vsel %vm1040_vm7, %v1006_v48, %v1039_v58 }
 0x1de   :  { %v763_v13 = vsel %vm713_vm3, %v688_v7, -inf  ;;  %v901_v7 = vrot.slane %v900_v63, 1  ;;  %v677_v16 = vadd.f32 %v1448_v52, %v676_v1  ;;  %v1026_v34 = vunpack.c.l.b16 %v962_v23 }
 0x1df   :  { %v761_v14 = vrot.slane %v760_v10, 1  ;;  %v764_v15 = vrot.slane %v763_v13, 4  ;;  %v903_v36 = vsel %vm713_vm3, %v708_v59, -inf  ;;  %v1043_v3 = vsel %vm1042_vm8, %v1007_v54, %v1041_v2 }
 0x1e0   :  { %v904_v5 = vrot.slane %v903_v36, 4  ;;  %v902_v19 = vmax.f32 %v900_v63, %v901_v7 }
 0x1e1   :  { %v765_v25 = vmax.f32 %v763_v13, %v764_v15  ;;  %v1482_v26 = vpop.f32.mrf.mxu2  ;;  %v762_v50 = vmax.f32 %v760_v10, %v761_v14  ;;  %v895_v10 = vmax.f32 %v893_v45, %v894_v0  ;;  %v672_v13 = vadd.f32 %v1448_v52, %v1475_v61 }
 0x1e2   :  { %v905_v12 = vmax.f32 %v903_v36, %v904_v5  ;;  %v674_v14 = vadd.f32 %v1448_v52, %v673_v27  ;;  %v964_v30 = vpack.c.bf16 %v902_v19, %v902_v19  ;;  %v622_v0 = vadd.f32 %v1448_v52, %v1482_v26 }
 0x1e3   :  { %v766_v31 = vrot.slane %v765_v25, 2  ;;  %v944_v43 = vpack.c.bf16 %v762_v50, %v762_v50  ;;  %v709_v21 = vmax.f32 %v672_v13, 0.0  ;;  %v963_v24 = vpack.c.bf16 %v895_v10, %v895_v10 }
 0x1e4   :  { %v906_v20 = vrot.slane %v905_v12, 2  ;;  %v710_v22 = vmax.f32 %v674_v14, 0.0 }
 0x1e5   :  { %v767_v39 = vmax.f32 %v765_v25, %v766_v31  ;;  %v1008_v51 = vunpack.c.l.b16 %v944_v43  ;;  %v711_v25 = vmax.f32 %v677_v16, 0.0  ;;  %v910_v61 = vsel %vm713_vm3, %v709_v21, -inf  ;;  %v678_v50 = vpop.f32.mrf.mxu3 }
 0x1e6   :  { %v907_v28 = vmax.f32 %v905_v12, %v906_v20  ;;  %v917_v27 = vsel %vm713_vm3, %v710_v22, -inf  ;;  %v911_v29 = vrot.slane %v910_v61, 4  ;;  %v1027_v35 = vunpack.c.l.b16 %v963_v24 }
 0x1e7   :  { %v768_v44 = vrot.slane %v767_v39, 1  ;;  %v1045_v6 = vsel %vm1044_vm9, %v1008_v51, %v1043_v3  ;;  %v918_v32 = vrot.slane %v917_v27, 4  ;;  %v924_v33 = vsel %vm713_vm3, %v711_v25, -inf }
 0x1e8   :  { %v908_v31 = vrot.slane %v907_v28, 1  ;;  %v912_v18 = vmax.f32 %v910_v61, %v911_v29  ;;  %v925_v37 = vrot.slane %v924_v33, 4  ;;  %v679_v40 = vadd.f32 %v1448_v52, %v678_v50 }
 0x1e9   :  { %v769_v55 = vmax.f32 %v767_v39, %v768_v44  ;;  %v1489_v56 = vpop.f32.mrf.mxu2  ;;  %v919_v39 = vmax.f32 %v917_v27, %v918_v32  ;;  %v1028_v44 = vunpack.c.l.b16 %v964_v30  ;;  %v1062_v47 = vsel %vm1034_vm4, %v1027_v35, %v1026_v34 }
 0x1ea   :  { %v909_v38 = vmax.f32 %v907_v28, %v908_v31  ;;  %v913_v42 = vrot.slane %v912_v18, 2  ;;  %v926_v43 = vmax.f32 %v924_v33, %v925_v37  ;;  %v712_v46 = vmax.f32 %v679_v40, 0.0 }
 0x1eb   :  { %v945_v60 = vpack.c.bf16 %v769_v55, %v769_v55  ;;  %v920_v45 = vrot.slane %v919_v39, 2  ;;  %v624_v55 = vadd.f32 %v1448_v52, %v1489_v56  ;;  %v1063_v59 = vsel %vm1036_vm5, %v1028_v44, %v1062_v47 }
 0x1ec   :  { %v965_v17 = vpack.c.bf16 %v909_v38, %v909_v38  ;;  %v914_v48 = vmax.f32 %v912_v18, %v913_v42  ;;  %v927_v49 = vrot.slane %v926_v43, 2  ;;  %v931_v54 = vsel %vm713_vm3, %v712_v46, -inf }
 0x1ed   :  { %v1009_v4 = vunpack.c.l.b16 %v945_v60  ;;  %v921_v53 = vmax.f32 %v919_v39, %v920_v45  ;;  %v932_v62 = vrot.slane %v931_v54, 4  ;;  %v690_v5 = vmax.f32 %v624_v55, 0.0 }
 0x1ee   :  { %v1029_v57 = vunpack.c.l.b16 %v965_v17  ;;  %v915_v58 = vrot.slane %v914_v48, 1  ;;  %v928_v51 = vmax.f32 %v926_v43, %v927_v49  ;;  %v689_v12 = vmax.f32 %v622_v0, 0.0 }
 0x1ef   :  { %v1047_v8 = vsel %vm1046_vm10, %v1009_v4, %v1045_v6  ;;  %v922_v60 = vrot.slane %v921_v53, 1  ;;  %v933_v4 = vmax.f32 %v931_v54, %v932_v62  ;;  %v777_v22 = vsel %vm713_vm3, %v690_v5, -inf }
 0x1f0   :  { %v1069_v11 = vpack.c.b16 %v1047_v8, %v1047_v8  ;;  %v916_v1 = vmax.f32 %v914_v48, %v915_v58  ;;  %v929_v3 = vrot.slane %v928_v51, 1  ;;  %v1064_v56 = vsel %vm1038_vm6, %v1029_v57, %v1063_v59 }
 0x1f1   :  { %v626_v15 = vpop.f32.mrf.mxu2  ;;  %v923_v36 = vmax.f32 %v921_v53, %v922_v60  ;;  %v770_v28 = vsel %vm713_vm3, %v689_v12, -inf  ;;  %v778_v50 = vrot.slane %v777_v22, 4 }
 0x1f2   :  { %1078 = vst.msk [vmem:[%s1584_s7] sm:$0xf] %vm1077_vm11, %v1069_v11  ;;  %v627_v63 = vadd.f32 %v1448_v52, %v626_v15  ;;  %v966_v6 = vpack.c.bf16 %v916_v1, %v916_v1  ;;  %v930_v10 = vmax.f32 %v928_v51, %v929_v3  ;;  %v934_v11 = vrot.slane %v933_v4, 2 }
 0x1f3   :  { %v967_v9 = vpack.c.bf16 %v923_v36, %v923_v36  ;;  %v771_v35 = vrot.slane %v770_v28, 4 }
 0x1f4   :  { %v691_v26 = vmax.f32 %v627_v63, 0.0  ;;  %v1030_v13 = vunpack.c.l.b16 %v966_v6  ;;  %v968_v16 = vpack.c.bf16 %v930_v10, %v930_v10  ;;  %v935_v19 = vmax.f32 %v933_v4, %v934_v11 }
 0x1f5   :  { %v1031_v15 = vunpack.c.l.b16 %v967_v9  ;;  %v772_v17 = vmax.f32 %v770_v28, %v771_v35 }
 0x1f6   :  { %v1065_v20 = vsel %vm1040_vm7, %v1030_v13, %v1064_v56  ;;  %v936_v23 = vrot.slane %v935_v19, 1  ;;  %v784_v24 = vsel %vm713_vm3, %v691_v26, -inf  ;;  %v1032_v25 = vunpack.c.l.b16 %v968_v16 }
 0x1f7   :  { %v1066_v27 = vsel %vm1042_vm8, %v1031_v15, %v1065_v20  ;;  %v785_v32 = vrot.slane %v784_v24, 4  ;;  %v773_v58 = vrot.slane %v772_v17, 2 }
 0x1f8   :  { %v937_v29 = vmax.f32 %v935_v19, %v936_v23  ;;  %v1067_v37 = vsel %vm1044_vm9, %v1032_v25, %v1066_v27 }
 0x1f9   :  { %v628_v41 = vpop.f32.mrf.mxu2  ;;  %v786_v42 = vmax.f32 %v784_v24, %v785_v32 }
 0x1fa   :  { %v629_v2 = vadd.f32 %v1448_v52, %v628_v41  ;;  %v969_v34 = vpack.c.bf16 %v937_v29, %v937_v29  ;;  %v779_v41 = vmax.f32 %v777_v22, %v778_v50 }
 0x1fb   :  { %v787_v55 = vrot.slane %v786_v42, 2 }
 0x1fc   :  { %v692_v14 = vmax.f32 %v629_v2, 0.0  ;;  %v1033_v40 = vunpack.c.l.b16 %v969_v34  ;;  %v780_v49 = vrot.slane %v779_v41, 2  ;;  %v774_v2 = vmax.f32 %v772_v17, %v773_v58 }
 0x1fd   :  { %v788_v63 = vmax.f32 %v786_v42, %v787_v55 }
 0x1fe   :  { %v791_v61 = vsel %vm713_vm3, %v692_v14, -inf  ;;  %v1068_v44 = vsel %vm1046_vm10, %v1033_v40, %v1067_v37  ;;  %v781_v62 = vmax.f32 %v779_v41, %v780_v49  ;;  %v775_v10 = vrot.slane %v774_v2, 1 }
 0x1ff   :  { %v792_v18 = vrot.slane %v791_v61, 4  ;;  %v1072_v47 = vpack.c.b16 %v1068_v44, %v1068_v44 }
 0x200   :  { %v782_v5 = vrot.slane %v781_v62, 1 }
 0x201   :  { %v631_v7 = vpop.f32.mrf.mxu2  ;;  %v793_v45 = vmax.f32 %v791_v61, %v792_v18  ;;  %1081 = vst.msk [vmem:[%s1584_s7 + $0xc] sm:$0xf] %vm1077_vm11, %v1072_v47 }
 0x202   :  { %v632_v8 = vadd.f32 %v1448_v52, %v631_v7  ;;  %v783_v14 = vmax.f32 %v781_v62, %v782_v5 }
 0x203   :  { %v794_v51 = vrot.slane %v793_v45, 2 }
 0x204   :  { %v693_v21 = vmax.f32 %v632_v8, 0.0  ;;  %v789_v8 = vrot.slane %v788_v63, 1  ;;  %v947_v28 = vpack.c.bf16 %v783_v14, %v783_v14 }
 0x205   :  { %v795_v36 = vmax.f32 %v793_v45, %v794_v51 }
 0x206   :  { %v798_v30 = vsel %vm713_vm3, %v693_v21, -inf  ;;  %v790_v19 = vmax.f32 %v788_v63, %v789_v8  ;;  %v776_v21 = vmax.f32 %v774_v2, %v775_v10  ;;  %v1011_v35 = vunpack.c.l.b16 %v947_v28 }
 0x207   :  { %v799_v38 = vrot.slane %v798_v30, 4  ;;  %v796_v11 = vrot.slane %v795_v36, 1 }
 0x208   :  { %v948_v50 = vpack.c.bf16 %v790_v19, %v790_v19 }
 0x209   :  { %v633_v31 = vpop.f32.mrf.mxu2  ;;  %v800_v48 = vmax.f32 %v798_v30, %v799_v38  ;;  %v797_v22 = vmax.f32 %v795_v36, %v796_v11 }
 0x20a   :  { %v634_v33 = vadd.f32 %v1448_v52, %v633_v31  ;;  %v946_v31 = vpack.c.bf16 %v776_v21, %v776_v21  ;;  %v1012_v38 = vunpack.c.l.b16 %v948_v50 }
 0x20b   :  { %v801_v59 = vrot.slane %v800_v48, 2  ;;  %v949_v32 = vpack.c.bf16 %v797_v22, %v797_v22 }
 0x20c   :  { %v694_v39 = vmax.f32 %v634_v33, 0.0  ;;  %v1010_v40 = vunpack.c.l.b16 %v946_v31 }
 0x20d   :  { %v802_v4 = vmax.f32 %v800_v48, %v801_v59  ;;  %v1013_v41 = vunpack.c.l.b16 %v949_v32 }
 0x20e   :  { %v805_v43 = vsel %vm713_vm3, %v694_v39, -inf  ;;  %v1048_v44 = vsel %vm1034_vm4, %v1011_v35, %v1010_v40 }
 0x20f   :  { %v806_v46 = vrot.slane %v805_v43, 4  ;;  %v803_v26 = vrot.slane %v802_v4, 1  ;;  %v1049_v47 = vsel %vm1036_vm5, %v1012_v38, %v1048_v44 }
 0x210   :  { %v1050_v49 = vsel %vm1038_vm6, %v1013_v41, %v1049_v47 }
 0x211   :  { %v807_v53 = vmax.f32 %v805_v43, %v806_v46  ;;  %v636_v54 = vpop.f32.mrf.mxu2  ;;  %v804_v25 = vmax.f32 %v802_v4, %v803_v26 }
 0x212   :  { %v637_v57 = vadd.f32 %v1448_v52, %v636_v54 }
 0x213   :  { %v808_v0 = vrot.slane %v807_v53, 2  ;;  %v950_v34 = vpack.c.bf16 %v804_v25, %v804_v25 }
 0x214   :  { %v695_v60 = vmax.f32 %v637_v57, 0.0 }
 0x215   :  { %v809_v56 = vmax.f32 %v807_v53, %v808_v0  ;;  %v1014_v43 = vunpack.c.l.b16 %v950_v34 }
 0x216   :  { %v812_v1 = vsel %vm713_vm3, %v695_v60, -inf }
 0x217   :  { %v813_v3 = vrot.slane %v812_v1, 4  ;;  %v810_v15 = vrot.slane %v809_v56, 1  ;;  %v1051_v54 = vsel %vm1040_vm7, %v1014_v43, %v1050_v49 }
 0x219   :  { %v814_v6 = vmax.f32 %v812_v1, %v813_v3  ;;  %v638_v7 = vpop.f32.mrf.mxu2  ;;  %v811_v61 = vmax.f32 %v809_v56, %v810_v15 }
 0x21a   :  { %v639_v9 = vadd.f32 %v1448_v52, %v638_v7 }
 0x21b   :  { %v815_v12 = vrot.slane %v814_v6, 2  ;;  %v951_v18 = vpack.c.bf16 %v811_v61, %v811_v61 }
 0x21c   :  { %v696_v13 = vmax.f32 %v639_v9, 0.0 }
 0x21d   :  { %v816_v16 = vmax.f32 %v814_v6, %v815_v12  ;;  %v1015_v17 = vunpack.c.l.b16 %v951_v18 }
 0x21e   :  { %v819_v20 = vsel %vm713_vm3, %v696_v13, -inf }
 0x21f   :  { %v817_v23 = vrot.slane %v816_v16, 1  ;;  %v820_v24 = vrot.slane %v819_v20, 4  ;;  %v1052_v55 = vsel %vm1042_vm8, %v1015_v17, %v1051_v54 }
 0x221   :  { %v821_v27 = vmax.f32 %v819_v20, %v820_v24  ;;  %v641_v29 = vpop.f32.mrf.mxu2  ;;  %v818_v30 = vmax.f32 %v816_v16, %v817_v23 }
 0x222   :  { %v642_v1 = vadd.f32 %v1448_v52, %v641_v29 }
 0x223   :  { %v822_v33 = vrot.slane %v821_v27, 2  ;;  %v952_v39 = vpack.c.bf16 %v818_v30, %v818_v30 }
 0x224   :  { %v697_v56 = vmax.f32 %v642_v1, 0.0 }
 0x225   :  { %v823_v37 = vmax.f32 %v821_v27, %v822_v33  ;;  %v1016_v48 = vunpack.c.l.b16 %v952_v39 }
 0x226   :  { %v826_v10 = vsel %vm713_vm3, %v697_v56, -inf }
 0x227   :  { %v824_v42 = vrot.slane %v823_v37, 1  ;;  %v1053_v58 = vsel %vm1044_vm9, %v1016_v48, %v1052_v55  ;;  %v827_v16 = vrot.slane %v826_v10, 4 }
 0x229   :  { %v825_v45 = vmax.f32 %v823_v37, %v824_v42  ;;  %v643_v46 = vpop.f32.mrf.mxu2  ;;  %v828_v25 = vmax.f32 %v826_v10, %v827_v16 }
 0x22a   :  { %v644_v0 = vadd.f32 %v1448_v52, %v643_v46 }
 0x22b   :  { %v953_v53 = vpack.c.bf16 %v825_v45, %v825_v45  ;;  %v829_v33 = vrot.slane %v828_v25, 2 }
 0x22c   :  { %v698_v3 = vmax.f32 %v644_v0, 0.0 }
 0x22d   :  { %v1017_v57 = vunpack.c.l.b16 %v953_v53  ;;  %v830_v41 = vmax.f32 %v828_v25, %v829_v33 }
 0x22e   :  { %v833_v8 = vsel %vm713_vm3, %v698_v3, -inf }
 0x22f   :  { %v1054_v51 = vsel %vm1046_vm10, %v1017_v57, %v1053_v58  ;;  %v834_v12 = vrot.slane %v833_v8, 4  ;;  %v831_v53 = vrot.slane %v830_v41, 1 }
 0x230   :  { %v1070_v59 = vpack.c.b16 %v1054_v51, %v1054_v51 }
 0x231   :  { %v646_v60 = vpop.f32.mrf.mxu2  ;;  %v835_v22 = vmax.f32 %v833_v8, %v834_v12 }
 0x232   :  { %1079 = vst.msk [vmem:[%s1584_s7 + $0x4] sm:$0xf] %vm1077_vm11, %v1070_v59  ;;  %v647_v63 = vadd.f32 %v1448_v52, %v646_v60 }
 0x233   :  { %v836_v29 = vrot.slane %v835_v22, 2 }
 0x234   :  { %v699_v5 = vmax.f32 %v647_v63, 0.0  ;;  %v832_v63 = vmax.f32 %v830_v41, %v831_v53 }
 0x235   :  { %v837_v37 = vmax.f32 %v835_v22, %v836_v29 }
 0x236   :  { %v840_v9 = vsel %vm713_vm3, %v699_v5, -inf }
 0x237   :  { %v841_v14 = vrot.slane %v840_v9, 4  ;;  %v838_v17 = vrot.slane %v837_v37, 1 }
 0x239   :  { %v648_v62 = vpop.f32.mrf.mxu2  ;;  %v842_v23 = vmax.f32 %v840_v9, %v841_v14  ;;  %v839_v51 = vmax.f32 %v837_v37, %v838_v17 }
 0x23a   :  { %v649_v2 = vadd.f32 %v1448_v52, %v648_v62 }
 0x23b   :  { %v843_v31 = vrot.slane %v842_v23, 2 }
 0x23c   :  { %v700_v6 = vmax.f32 %v649_v2, 0.0 }
 0x23d   :  { %v844_v39 = vmax.f32 %v842_v23, %v843_v31 }
 0x23e   :  { %v847_v11 = vsel %vm713_vm3, %v700_v6, -inf }
 0x23f   :  { %v848_v19 = vrot.slane %v847_v11, 4  ;;  %v845_v48 = vrot.slane %v844_v39, 1 }
 0x241   :  { %v651_v36 = vpop.f32.mrf.mxu2  ;;  %v849_v28 = vmax.f32 %v847_v11, %v848_v19  ;;  %v846_v62 = vmax.f32 %v844_v39, %v845_v48 }
 0x242   :  { %v652_v4 = vadd.f32 %v1448_v52, %v651_v36 }
 0x243   :  { %v850_v34 = vrot.slane %v849_v28, 2 }
 0x244   :  { %v701_v7 = vmax.f32 %v652_v4, 0.0  ;;  %v955_v4 = vpack.c.bf16 %v839_v51, %v839_v51 }
 0x245   :  { %v851_v42 = vmax.f32 %v849_v28, %v850_v34 }
 0x246   :  { %v854_v26 = vsel %vm713_vm3, %v701_v7, -inf  ;;  %v954_v7 = vpack.c.bf16 %v832_v63, %v832_v63  ;;  %v1019_v11 = vunpack.c.l.b16 %v955_v4 }
 0x247   :  { %v855_v20 = vrot.slane %v854_v26, 4  ;;  %v852_v54 = vrot.slane %v851_v42, 1 }
 0x249   :  { %v653_v13 = vpop.f32.mrf.mxu2  ;;  %v856_v27 = vmax.f32 %v854_v26, %v855_v20  ;;  %v853_v1 = vmax.f32 %v851_v42, %v852_v54 }
 0x24a   :  { %v654_v15 = vadd.f32 %v1448_v52, %v653_v13 }
 0x24b   :  { %v857_v35 = vrot.slane %v856_v27, 2  ;;  %v957_v8 = vpack.c.bf16 %v853_v1, %v853_v1 }
 0x24c   :  { %v702_v21 = vmax.f32 %v654_v15, 0.0  ;;  %v1018_v15 = vunpack.c.l.b16 %v954_v7 }
 0x24d   :  { %v858_v44 = vmax.f32 %v856_v27, %v857_v35  ;;  %v1021_v16 = vunpack.c.l.b16 %v957_v8 }
 0x24e   :  { %v861_v24 = vsel %vm713_vm3, %v702_v21, -inf  ;;  %v1055_v21 = vsel %vm1034_vm4, %v1019_v11, %v1018_v15 }
 0x24f   :  { %v862_v61 = vrot.slane %v861_v24, 4  ;;  %v859_v57 = vrot.slane %v858_v44, 1 }
 0x251   :  { %v863_v50 = vmax.f32 %v861_v24, %v862_v61  ;;  %v656_v30 = vpop.f32.mrf.mxu2  ;;  %v860_v3 = vmax.f32 %v858_v44, %v859_v57 }
 0x252   :  { %v657_v32 = vadd.f32 %v1448_v52, %v656_v30 }
 0x253   :  { %v864_v38 = vrot.slane %v863_v50, 2  ;;  %v958_v10 = vpack.c.bf16 %v860_v3, %v860_v3 }
 0x254   :  { %v703_v18 = vmax.f32 %v657_v32, 0.0 }
 0x255   :  { %v865_v45 = vmax.f32 %v863_v50, %v864_v38  ;;  %v1022_v20 = vunpack.c.l.b16 %v958_v10 }
 0x256   :  { %v868_v40 = vsel %vm713_vm3, %v703_v18, -inf }
 0x257   :  { %v869_v43 = vrot.slane %v868_v40, 4  ;;  %v866_v59 = vrot.slane %v865_v45, 1 }
 0x259   :  { %v870_v46 = vmax.f32 %v868_v40, %v869_v43  ;;  %v658_v47 = vpop.f32.mrf.mxu2  ;;  %v867_v5 = vmax.f32 %v865_v45, %v866_v59 }
 0x25a   :  { %v659_v49 = vadd.f32 %v1448_v52, %v658_v47  ;;  %v956_v52 = vpack.c.bf16 %v846_v62, %v846_v62 }
 0x25b   :  { %v871_v55 = vrot.slane %v870_v46, 2  ;;  %v959_v12 = vpack.c.bf16 %v867_v5, %v867_v5 }
 0x25c   :  { %v704_v58 = vmax.f32 %v659_v49, 0.0  ;;  %v1020_v13 = vunpack.c.l.b16 %v956_v52 }
 0x25d   :  { %v872_v60 = vmax.f32 %v870_v46, %v871_v55  ;;  %v1023_v22 = vunpack.c.l.b16 %v959_v12 }
 0x25e   :  { %v875_v0 = vsel %vm713_vm3, %v704_v58, -inf  ;;  %v1056_v24 = vsel %vm1036_vm5, %v1020_v13, %v1055_v21 }
 0x25f   :  { %v873_v2 = vrot.slane %v872_v60, 1  ;;  %v876_v36 = vrot.slane %v875_v0, 4  ;;  %v1057_v28 = vsel %vm1038_vm6, %v1021_v16, %v1056_v24 }
 0x260   :  { %v1058_v27 = vsel %vm1040_vm7, %v1022_v20, %v1057_v28 }
 0x261   :  { %v877_v56 = vmax.f32 %v875_v0, %v876_v36  ;;  %v874_v6 = vmax.f32 %v872_v60, %v873_v2  ;;  %v1059_v29 = vsel %vm1042_vm8, %v1023_v22, %v1058_v27 }
 0x263   :  { %v878_v9 = vrot.slane %v877_v56, 2  ;;  %v960_v14 = vpack.c.bf16 %v874_v6, %v874_v6 }
 0x265   :  { %v879_v26 = vmax.f32 %v877_v56, %v878_v9  ;;  %v1024_v25 = vunpack.c.l.b16 %v960_v14 }
 0x267   :  { %v880_v19 = vrot.slane %v879_v26, 1  ;;  %v1060_v30 = vsel %vm1044_vm9, %v1024_v25, %v1059_v29 }
 0x269   :  { %v881_v23 = vmax.f32 %v879_v26, %v880_v19 }
 0x26b   :  { %v961_v61 = vpack.c.bf16 %v881_v23, %v881_v23 }
 0x26d   :  { %v1025_v50 = vunpack.c.l.b16 %v961_v61 }
 0x26f   :  { %v1061_v31 = vsel %vm1046_vm10, %v1025_v50, %v1060_v30 }
 0x270   :  { %v1071_v32 = vpack.c.b16 %v1061_v31, %v1061_v31 }
 0x272   :  { %1080 = vst.msk [vmem:[%s1584_s7 + $0x8] sm:$0xf] %vm1077_vm11, %v1071_v32 }

// kernel: _lambda_.7
= control target key start
LH: loop header
LB: loop body
LE: loop exit
PB: predicated region body
PF: predicated region fallthrough
CT: control target
= control target key end

     0   :  { %s1094_s27 = smov 0   ;;  %s1296_s0 = inlined_call_operand.vmem [shape: bf16[128,192], index: 0, kind: input, shape index: {}]   ;;  %s1297_s1 = inlined_call_operand.vmem [shape: f32[128,3], index: 1, kind: input, shape index: {}]   ;;  %s1298_s2 = inlined_call_operand.vmem [shape: bf16[128,4], index: 2, kind: input, shape index: {}]   ;;  %s1299_s3 = inlined_call_operand.vmem [shape: bf16[64,32], index: 3, kind: input, shape index: {}]   ;;  %s1300_s4 = inlined_call_operand.vmem [shape: bf16[4,32], index: 4, kind: input, shape index: {}]   ;;  %s1301_s5 = inlined_call_operand.vmem [shape: f32[1,32], index: 5, kind: input, shape index: {}]   ;;  %s1302_s6 = inlined_call_operand.vmem [shape: bf16[32,32], index: 6, kind: input, shape index: {}]   ;;  %s1303_s7 = inlined_call_operand.vmem [shape: f32[1,32], index: 7, kind: input, shape index: {}]   ;;  %s1304_s8 = inlined_call_operand.vmem [shape: f32[128,32], index: 8, kind: output, shape index: {}]  }
   0x1 LB: > { %s924_s28 = sadd.s32 4294967295, %s1043_s27   ;;  %p928_p0 = scmp.ge.s32.totalorder %s1043_s27, 1  ;;  %s1043_s27 = sphi %s1094_s27, %s18_s27  }
   0x2   : > { %p286_p1 = scmp.lt.s32.totalorder %s1043_s27, 3 }
   0x4   : > { %p287_p2 = pnand %p928_p0, %p286_p1 }
   0x5   : > { %s929_s29 = sshll.u32 (!%p287_p2), %s924_s28, 3  ;;  %s1048_s15 = smov (!%p287_p2), 64  }
   0x6   : > { %290 = sbr.rel (%p287_p2) target bundleno = 602 (0x25a), region = 52  ;;  %p332_p3 = scmp.lt.s32.totalorder (!%p287_p2), %s929_s29, 15 }
   0xb   : > { %v1045_v0 = vmov 1   ;;  %s1306_s29 = smov (!%p332_p3, %s929_s29), 15  ;;  %v1046_v7 = vmov 0   ;;  %v1047_v8 = vmov 2   ;;  %v996_v49 = vld [vmem:[%s1299_s3 + $0x18] sm:$0xff]  ;;  %v995_v50 = vld [vmem:[%s1299_s3 + $0x10] sm:$0xff] }
   0xc   : > { %1020 = vset.pattern.permute.xlu1 %v1045_v0  ;;  %1019 = vset.pattern.permute.xlu0 %v1045_v0  ;;  %s1105_s30 = sshll.u32 %s1306_s29, 3  ;;  %v994_v52 = vld [vmem:[%s1299_s3 + $0x8] sm:$0xff]  ;;  %s935_s22 = sshll.u32 %s1306_s29, 2  ;;  %v609_v55 = vld [vmem:[%s1300_s4] sm:$0x3]  ;;  %vm643_vm0 = vcmask 1041408  }
   0xd   : > { %1021 = vset.pattern.permute.xlu2 %v1045_v0  ;;  %s342_s11 = scalar_lea.vmem %s1297_s1, %s1105_s30  ;;  %s1136_s14 = scalar_lea.vmem %s1296_s0, %s1105_s30  ;;  %717 = vmatpush.bf16.msra.mxu1 %v996_v49  ;;  %v645_v57 = vsel %vm643_vm0, %v609_v55, 0  ;;  %v993_v58 = vld [vmem:[%s1299_s3] sm:$0xff]  ;;  %vm630_vm1 = vcmask 31744   ;;  %vm700_vm2 = vcmask 523264   ;;  %vm786_vm3 = vcmask 261120  }
   0xe   : > { %v1111_v1 = vld [vmem:[%s342_s11 + $0x10] sm:$0xff]  ;;  %v365_v2 = vld [vmem:[%s342_s11] sm:$0xff]  ;;  %v368_v4 = vld [vmem:[%s342_s11 + $0x18] sm:$0xff]  ;;  %1003 = vmatpush.bf16.msra.mxu3 %v996_v49  ;;  %s1228_s28 = scalar_lea.vmem %s1298_s2, %s935_s22  ;;  %654 = vmatpush.bf16.msra.mxu0 %v645_v57  ;;  %s354_s20 = scalar_lea.vmem %s1304_s8, %s1105_s30 }
   0xf   : > { %438 = vperm.xlu1 %1020, %v1111_v1   ;;  %430 = vperm.xlu0 %1019, %v365_v2   ;;  %v1114_v3 = vld [vmem:[%s342_s11 + $0x20] sm:$0xff]  ;;  %v366_v5 = vld [vmem:[%s342_s11 + $0x8] sm:$0xff]  ;;  %v1123_v9 = vld [vmem:[%s342_s11 + $0x30] sm:$0xff] }
  0x10   : > { %446 = vperm.xlu2 %1021, %v1114_v3   ;;  %v1117_v6 = vld [vmem:[%s342_s11 + $0x28] sm:$0xff]  ;;  %v1125_v10 = vld [vmem:[%s342_s11 + $0x38] sm:$0xff]  ;;  %v1139_v11 = vld [vmem:[%s1136_s14 + $0x10] sm:$0xff] }
  0x11   : > { %v1142_v12 = vld [vmem:[%s1136_s14] sm:$0xff]  ;;  %v375_v14 = vunpack.c.l.bf16 %v1139_v11  ;;  %v1151_v20 = vld [vmem:[%s1136_s14 + $0x8] sm:$0xff]  ;;  %v1166_v34 = vld [vmem:[%s1136_s14 + $0x18] sm:$0xff]  ;;  %718 = vmatpush.bf16.msra.mxu1 %v995_v50 }
  0x12   : > { %v373_v15 = vunpack.c.l.bf16 %v1142_v12  ;;  %v374_v22 = vunpack.c.l.bf16 %v1151_v20  ;;  %v1157_v25 = vld [vmem:[%s1136_s14 + $0x20] sm:$0xff]  ;;  %v517_v28 = vrot.slane %v1142_v12, 4  ;;  %v1173_v36 = vld [vmem:[%s1136_s14 + $0x30] sm:$0xff]  ;;  %v376_v37 = vunpack.c.l.bf16 %v1166_v34  ;;  %v1188_v42 = vld [vmem:[%s1136_s14 + $0x28] sm:$0xff]  ;;  %1004 = vmatpush.bf16.msra.mxu3 %v995_v50 }
  0x13   : > { %v377_v27 = vunpack.c.l.bf16 %v1157_v25  ;;  %v379_v38 = vunpack.c.l.bf16 %v1173_v36  ;;  %v378_v43 = vunpack.c.l.bf16 %v1188_v42  ;;  %v1200_v45 = vld [vmem:[%s1136_s14 + $0x38] sm:$0xff]  ;;  %v997_v60 = vld [vmem:[%s1228_s28] sm:$0xff]  ;;  %v998_v61 = vld [vmem:[%s1228_s28 + $0x8] sm:$0xff]  ;;  %v518_v63 = vrot.slane %v1151_v20, 4 }
  0x14   : > { %v533_v30 = vunpack.c.l.bf16 %v517_v28  ;;  %v380_v46 = vunpack.c.l.bf16 %v1200_v45  ;;  %954 = vmatmul.msk.bf16.vlgmr.msra.gmra.mxu0 %vm630_vm1, %v997_v60 }
  0x15   : > { %719 = vmatpush.bf16.msra.mxu1 %v994_v52 }
  0x16   : > { %1005 = vmatpush.bf16.msra.mxu3 %v994_v52 }
  0x17   : > { %442 = vperm.xlu1 %1020, %v368_v4   ;;  %434 = vperm.xlu0 %1019, %v366_v5  }
  0x18   : > { %450 = vperm.xlu2 %1021, %v1117_v6  }
  0x19   : > { %720 = vmatpush.bf16.msra.mxu1 %v993_v58 }
  0x1a   : > { %1006 = vmatpush.bf16.msra.mxu3 %v993_v58 }
  0x1f   : > { %1023 = vset.pattern.permute.xlu1 %v1046_v7  ;;  %1022 = vset.pattern.permute.xlu0 %v1046_v7 }
  0x20   : > { %388 = vperm.xlu1 %1023, %v366_v5   ;;  %1024 = vset.pattern.permute.xlu2 %v1047_v8 }
  0x21   : > { %542 = vperm.xlu2 %1024, %v365_v2   ;;  %383 = vperm.xlu0 %1022, %v365_v2  }
  0x24   : > { %955 = vmatmul.msk.bf16.gmra.mxu0 %vm630_vm1, %v998_v61 }
  0x28   : > { %1026 = vset.pattern.permute.xlu1 %v1045_v0 }
  0x29   : > { %454 = vperm.xlu1 %1026, %v1123_v9   ;;  %1027 = vset.pattern.permute.xlu2 %v1045_v0 }
  0x2a   : > { %458 = vperm.xlu2 %1027, %v1125_v10   ;;  %1025 = vset.pattern.permute.xlu0 %v1047_v8 }
  0x2b   : > { %546 = vperm.xlu0 %1025, %v366_v5  }
  0x31   : > { %1028 = vset.pattern.permute.xlu1 %v1046_v7 }
  0x32   : > { %1029 = vset.pattern.permute.xlu2 %v1046_v7 }
  0x33   : > { %554 = vperm.xlu0 %1025, %v368_v4  }
  0x6a   : > { %v447_v13 = vpop.permute.xlu2 %446 }
  0x6b   : > { %v465_v31 = vmul.f32 %v447_v13, %v377_v27 }
  0x72   : > { %v451_v21 = vpop.permute.xlu2 %450 }
  0x73   : > { %v466_v44 = vmul.f32 %v451_v21, %v378_v43 }
  0x7b   : > { %v543_v29 = vpop.permute.xlu2 %542 }
  0x7c   : > { %v573_v32 = vmul.f32 %v543_v29, %v533_v30 }
  0x81   : > { %v439_v16 = vpop.permute.xlu1 %438  ;;  %v431_v17 = vpop.permute.xlu0 %430 }
  0x82   : > { %v463_v18 = vmul.f32 %v439_v16, %v375_v14  ;;  %v461_v19 = vmul.f32 %v431_v17, %v373_v15 }
  0x84   : > { %481 = vrot.lane.b32.xlu0 %v463_v18, %s1048_s15  ;;  %477 = vrot.lane.b32.xlu2 %v461_v19, %s1048_s15  ;;  %v459_v47 = vpop.permute.xlu2 %458 }
  0x85   : > { %v468_v48 = vmul.f32 %v459_v47, %v380_v46 }
  0x89   : > { %v435_v23 = vpop.permute.xlu0 %434  ;;  %v443_v24 = vpop.permute.xlu1 %442 }
  0x8a   : > { %v462_v26 = vmul.f32 %v435_v23, %v374_v22  ;;  %v464_v39 = vmul.f32 %v443_v24, %v376_v37 }
  0x8c   : > { %562 = vperm.xlu0 %1025, %v1117_v6   ;;  %479 = vrot.lane.b32.xlu1 %v462_v26, %s1048_s15 }
  0x8d   : > { %398 = vperm.xlu2 %1029, %v368_v4  }
  0x92   : > { %v389_v33 = vpop.permute.xlu1 %388 }
  0x93   : > { %v1168_v35 = vmul.f32 %v389_v33, %v374_v22  ;;  %v384_v51 = vpop.permute.xlu0 %383 }
  0x94   : > { %393 = vperm.xlu1 %1028, %v1111_v1   ;;  %485 = vrot.lane.b32.xlu0 %v465_v31, %s1048_s15  ;;  %v421_v53 = vmul.f32 %v384_v51, %v373_v15  ;;  %v520_v15 = vrot.slane %v1166_v34, 4  ;;  %v1000_v31 = vld [vmem:[%s1228_s28 + $0x18] sm:$0xff]  ;;  %v522_v34 = vrot.slane %v1188_v42, 4 }
  0x95   : > { %1030 = vset.pattern.permute.xlu2 %v1047_v8 }
  0x96   : > { %550 = vperm.xlu2 %1030, %v1111_v1   ;;  %v534_v1 = vunpack.c.l.bf16 %v518_v63  ;;  %v536_v18 = vunpack.c.l.bf16 %v520_v15 }
  0x9b   : > { %v455_v40 = vpop.permute.xlu1 %454 }
  0x9c   : > { %v467_v41 = vmul.f32 %v455_v40, %v379_v38  ;;  %483 = vrot.lane.b32.xlu1 %v464_v39, %s1048_s15  ;;  %v538_v40 = vunpack.c.l.bf16 %v522_v34 }
  0x9d   : > { %v547_v62 = vpop.permute.xlu0 %546 }
  0x9e   : > { %489 = vrot.lane.b32.xlu0 %v467_v41, %s1048_s15  ;;  %1031 = vset.pattern.permute.xlu2 %v1046_v7 }
  0x9f   : > { %408 = vperm.xlu2 %1031, %v1117_v6  }
  0xa4   : > { %403 = vperm.xlu1 %1028, %v1114_v3  }
  0xa5   : > { %v555_v2 = vpop.permute.xlu0 %554 }
  0xa6   : > { %570 = vperm.xlu0 %1025, %v1125_v10   ;;  %v576_v24 = vmul.f32 %v555_v2, %v536_v18 }
  0xa7   : > { %1032 = vset.pattern.permute.xlu2 %v1047_v8 }
  0xa8   : > { %558 = vperm.xlu2 %1032, %v1114_v3   ;;  %v574_v3 = vmul.f32 %v547_v62, %v534_v1 }
  0xac   : > { %487 = vrot.lane.b32.xlu1 %v466_v44, %s1048_s15 }
  0xb0   : > { %1033 = vset.pattern.permute.xlu2 %v1046_v7  ;;  %v999_v7 = vld [vmem:[%s1228_s28 + $0x10] sm:$0xff] }
  0xb1   : > { %418 = vperm.xlu2 %1033, %v1125_v10   ;;  %956 = vmatmul.msk.bf16.gmra.mxu0 %vm630_vm1, %v999_v7  ;;  %v519_v10 = vrot.slane %v1139_v11, 4  ;;  %v521_v11 = vrot.slane %v1157_v25, 4  ;;  %v523_v25 = vrot.slane %v1173_v36, 4  ;;  %v1002_v36 = vld [vmem:[%s1302_s6 + $0x8] sm:$0xff]  ;;  %v1035_v7 = vld [vmem:[%s1301_s5] ss:$0 sm:$0xff] }
  0xb2   : > { %805 = vmatpush.bf16.msra.mxu2 %v1002_v36 }
  0xb3   : > { %v535_v17 = vunpack.c.l.bf16 %v519_v10  ;;  %v537_v39 = vunpack.c.l.bf16 %v521_v11 }
  0xb4   : > { %413 = vperm.xlu1 %1028, %v1123_v9  }
  0xb9   : > { %1034 = vset.pattern.permute.xlu2 %v1047_v8 }
  0xba   : > { %566 = vperm.xlu2 %1034, %v1123_v9  }
  0xbc   : > { %491 = vrot.lane.b32.xlu1 %v468_v48, %s1048_s15 }
  0xc1   : > { %957 = vmatmul.msk.bf16.gmra.mxu0 %vm630_vm1, %v1000_v31 }
  0xde   : > { %v478_v54 = vpop.permute.xlu2 %477 }
  0xdf   : > { %v501_v56 = vadd.f32 %v478_v54, %v421_v53 }
  0xe1   : > { %v581_v59 = vadd.f32 %v573_v32, %v501_v56  ;;  %v524_v56 = vrot.slane %v1200_v45, 4  ;;  %v656_v45 = vpop.f32.mrf.mxu0 }
  0xe3   : > { %v540_v58 = vunpack.c.l.bf16 %v524_v56 }
  0xe7   : > { %v399_v0 = vpop.permute.xlu2 %398 }
  0xe8   : > { %v424_v20 = vmul.f32 %v399_v0, %v376_v37 }
  0xf0   : > { %v551_v8 = vpop.permute.xlu2 %550 }
  0xf1   : > { %v575_v22 = vmul.f32 %v551_v8, %v535_v17 }
  0xf6   : > { %v482_v12 = vpop.permute.xlu0 %481 }
  0xf9   : > { %v409_v19 = vpop.permute.xlu2 %408 }
  0xfa   : > { %v426_v41 = vmul.f32 %v409_v19, %v378_v43  ;;  %v539_v43 = vunpack.c.l.bf16 %v523_v25  ;;  %v1036_v25 = vld [vmem:[%s1303_s7] ss:$0 sm:$0xff] }
  0xfe   : > { %v480_v4 = vpop.permute.xlu1 %479  ;;  %v563_v28 = vpop.permute.xlu0 %562 }
  0xff   : > { %v502_v5 = vadd.f32 %v480_v4, %v1168_v35  ;;  %v578_v49 = vmul.f32 %v563_v28, %v538_v40 }
 0x101   : > { %v582_v6 = vadd.f32 %v574_v3, %v502_v5  ;;  %v658_v5 = vpop.f32.mrf.mxu0 }
 0x102   : > { %v559_v33 = vpop.permute.xlu2 %558 }
 0x103   : > { %v589_v9 = vpack.c.bf16 %v582_v6, %v581_v59  ;;  %v577_v47 = vmul.f32 %v559_v33, %v537_v39 }
 0x105   : > { %974 = vmatmul.msk.bf16.vlgmr.msra.gmra.mxu1 %vm700_vm2, %v589_v9 }
 0x106   : > { %v394_v13 = vpop.permute.xlu1 %393  ;;  %v486_v35 = vpop.permute.xlu0 %485 }
 0x107   : > { %v423_v16 = vmul.f32 %v394_v13, %v375_v14 }
 0x109   : > { %v503_v21 = vadd.f32 %v482_v12, %v423_v16  ;;  %v661_v13 = vpop.f32.mrf.mxu0 }
 0x10b   : > { %v583_v29 = vadd.f32 %v575_v22, %v503_v21  ;;  %v419_v51 = vpop.permute.xlu2 %418 }
 0x10c   : > { %v428_v60 = vmul.f32 %v419_v51, %v380_v46 }
 0x10e   : > { %v484_v23 = vpop.permute.xlu1 %483 }
 0x10f   : > { %v504_v26 = vadd.f32 %v484_v23, %v424_v20 }
 0x110   : > { %v490_v54 = vpop.permute.xlu0 %489 }
 0x111   : > { %v584_v30 = vadd.f32 %v576_v24, %v504_v26  ;;  %v663_v18 = vpop.f32.mrf.mxu0 }
 0x113   : > { %v590_v32 = vpack.c.bf16 %v584_v30, %v583_v29 }
 0x114   : > { %v567_v57 = vpop.permute.xlu2 %566 }
 0x115   : > { %975 = vmatmul.msk.bf16.vlgmr.msra.gmra.mxu3 %vm700_vm2, %v590_v32  ;;  %v579_v62 = vmul.f32 %v567_v57, %v539_v43 }
 0x116   : > { %v404_v14 = vpop.permute.xlu1 %403 }
 0x117   : > { %v425_v37 = vmul.f32 %v404_v14, %v377_v27 }
 0x118   : > { %v571_v59 = vpop.permute.xlu0 %570 }
 0x119   : > { %v505_v44 = vadd.f32 %v486_v35, %v425_v37  ;;  %v580_v0 = vmul.f32 %v571_v59, %v540_v58 }
 0x11b   : > { %v585_v52 = vadd.f32 %v577_v47, %v505_v44 }
 0x11e   : > { %v488_v48 = vpop.permute.xlu1 %487 }
 0x11f   : > { %v506_v50 = vadd.f32 %v488_v48, %v426_v41 }
 0x121   : > { %v586_v53 = vadd.f32 %v578_v49, %v506_v50 }
 0x123   : > { %v591_v55 = vpack.c.bf16 %v586_v53, %v585_v52 }
 0x125   : > { %976 = vmatmul.msk.bf16.gmra.mxu3 %vm700_vm2, %v591_v55 }
 0x126   : > { %v414_v27 = vpop.permute.xlu1 %413 }
 0x127   : > { %v427_v42 = vmul.f32 %v414_v27, %v379_v38  ;;  %v1001_v38 = vld [vmem:[%s1302_s6] sm:$0xff] }
 0x128   : > { %806 = vmatpush.bf16.msra.mxu2 %v1001_v38 }
 0x129   : > { %v507_v61 = vadd.f32 %v490_v54, %v427_v42 }
 0x12b   : > { %v587_v2 = vadd.f32 %v579_v62, %v507_v61 }
 0x12e   : > { %v492_v63 = vpop.permute.xlu1 %491  ;;  %v666_v24 = vpop.f32.mrf.mxu0 }
 0x12f   : > { %v508_v1 = vadd.f32 %v492_v63, %v428_v60 }
 0x131   : > { %v588_v3 = vadd.f32 %v580_v0, %v508_v1 }
 0x133   : > { %v592_v4 = vpack.c.bf16 %v588_v3, %v587_v2 }
 0x135   : > { %977 = vmatmul.msk.bf16.gmra.mxu3 %vm700_vm2, %v592_v4 }
 0x136   : > { %v668_v32 = vpop.f32.mrf.mxu0 }
 0x13e   : > { %v671_v40 = vpop.f32.mrf.mxu0 }
 0x146   : > { %v673_v48 = vpop.f32.mrf.mxu0 }
 0x182   : > { %v722_v46 = vpop.f32.mrf.mxu1 }
 0x183   : > { %v723_v6 = vadd.f32 %v722_v46, %v656_v45 }
 0x185   : > { %v746_v9 = vadd.f32 %v1035_v7, %v723_v6 }
 0x187   : > { %v754_v15 = vmax.f32 %v746_v9, 0.0 }
 0x18a   : > { %v724_v8 = vpop.f32.mrf.mxu1 }
 0x18b   : > { %v725_v10 = vadd.f32 %v724_v8, %v658_v5 }
 0x18d   : > { %v747_v12 = vadd.f32 %v1035_v7, %v725_v10 }
 0x18f   : > { %v755_v16 = vmax.f32 %v747_v12, 0.0 }
 0x191   : > { %v767_v17 = vpack.c.bf16 %v755_v16, %v754_v15 }
 0x193   : > { %986 = vmatmul.msk.bf16.vlgmr.msra.gmra.mxu2 %vm786_vm3, %v767_v17 }
 0x198   : > { %v727_v19 = vpop.f32.mrf.mxu3 }
 0x199   : > { %v728_v20 = vadd.f32 %v727_v19, %v661_v13 }
 0x19b   : > { %v748_v22 = vadd.f32 %v1035_v7, %v728_v20 }
 0x19d   : > { %v756_v28 = vmax.f32 %v748_v22, 0.0 }
 0x1a0   : > { %v729_v21 = vpop.f32.mrf.mxu3 }
 0x1a1   : > { %v730_v23 = vadd.f32 %v729_v21, %v663_v18 }
 0x1a3   : > { %v749_v26 = vadd.f32 %v1035_v7, %v730_v23 }
 0x1a5   : > { %v757_v29 = vmax.f32 %v749_v26, 0.0 }
 0x1a7   : > { %v768_v30 = vpack.c.bf16 %v757_v29, %v756_v28 }
 0x1a8   : > { %v732_v31 = vpop.f32.mrf.mxu3 }
 0x1a9   : > { %987 = vmatmul.msk.bf16.gmra.mxu2 %vm786_vm3, %v768_v30  ;;  %v733_v11 = vadd.f32 %v732_v31, %v666_v24 }
 0x1ab   : > { %v750_v33 = vadd.f32 %v1035_v7, %v733_v11 }
 0x1ad   : > { %v758_v37 = vmax.f32 %v750_v33, 0.0 }
 0x1b0   : > { %v734_v14 = vpop.f32.mrf.mxu3 }
 0x1b1   : > { %v735_v34 = vadd.f32 %v734_v14, %v668_v32 }
 0x1b3   : > { %v751_v35 = vadd.f32 %v1035_v7, %v735_v34 }
 0x1b5   : > { %v759_v39 = vmax.f32 %v751_v35, 0.0 }
 0x1b7   : > { %v769_v41 = vpack.c.bf16 %v759_v39, %v758_v37 }
 0x1b8   : > { %v737_v44 = vpop.f32.mrf.mxu3 }
 0x1b9   : > { %988 = vmatmul.msk.bf16.gmra.mxu2 %vm786_vm3, %v769_v41  ;;  %v738_v47 = vadd.f32 %v737_v44, %v671_v40 }
 0x1bb   : > { %v752_v50 = vadd.f32 %v1035_v7, %v738_v47 }
 0x1bd   : > { %v760_v53 = vmax.f32 %v752_v50, 0.0 }
 0x1c0   : > { %v739_v49 = vpop.f32.mrf.mxu3 }
 0x1c1   : > { %v740_v51 = vadd.f32 %v739_v49, %v673_v48 }
 0x1c3   : > { %v753_v52 = vadd.f32 %v1035_v7, %v740_v51 }
 0x1c5   : > { %v761_v54 = vmax.f32 %v753_v52, 0.0 }
 0x1c7   : > { %v770_v55 = vpack.c.bf16 %v761_v54, %v760_v53 }
 0x1c9   : > { %989 = vmatmul.msk.bf16.gmra.mxu2 %vm786_vm3, %v770_v55 }
 0x216   : > { %v808_v27 = vpop.f32.mrf.mxu2 }
 0x217   : > { %v809_v56 = vadd.f32 %v1036_v25, %v808_v27 }
 0x219   : > { %v828_v42 = vmax.f32 %v809_v56, 0.0 }
 0x21b   : > { %836 = vst.msk [vmem:[%s354_s20] sm:$0xff] %vm786_vm3, %v828_v42 }
 0x21e   : > { %v810_v43 = vpop.f32.mrf.mxu2 }
 0x21f   : > { %v811_v57 = vadd.f32 %v1036_v25, %v810_v43 }
 0x221   : > { %v829_v58 = vmax.f32 %v811_v57, 0.0 }
 0x223   : > { %837 = vst.msk [vmem:[%s354_s20 + $0x8] sm:$0xff] %vm786_vm3, %v829_v58 }
 0x22c   : > { %v813_v59 = vpop.f32.mrf.mxu2 }
 0x22d   : > { %v814_v60 = vadd.f32 %v1036_v25, %v813_v59 }
 0x22f   : > { %v830_v61 = vmax.f32 %v814_v60, 0.0 }
 0x231   : > { %838 = vst.msk [vmem:[%s354_s20 + $0x10] sm:$0xff] %vm786_vm3, %v830_v61 }
 0x234   : > { %v815_v62 = vpop.f32.mrf.mxu2 }
 0x235   : > { %v816_v63 = vadd.f32 %v1036_v25, %v815_v62 }
 0x237   : > { %v831_v0 = vmax.f32 %v816_v63, 0.0 }
 0x239   : > { %839 = vst.msk [vmem:[%s354_s20 + $0x18] sm:$0xff] %vm786_vm3, %v831_v0 }
 0x23c   : > { %v818_v1 = vpop.f32.mrf.mxu2 }
 0x23d   : > { %v819_v2 = vadd.f32 %v1036_v25, %v818_v1 }
 0x23f   : > { %v832_v3 = vmax.f32 %v819_v2, 0.0 }
 0x241   : > { %840 = vst.msk [vmem:[%s354_s20 + $0x20] sm:$0xff] %vm786_vm3, %v832_v3 }
 0x244   : > { %v820_v4 = vpop.f32.mrf.mxu2 }
 0x245   : > { %v821_v36 = vadd.f32 %v1036_v25, %v820_v4 }
 0x247   : > { %v833_v38 = vmax.f32 %v821_v36, 0.0 }
 0x249   : > { %841 = vst.msk [vmem:[%s354_s20 + $0x28] sm:$0xff] %vm786_vm3, %v833_v38 }
 0x24c   : > { %v823_v45 = vpop.f32.mrf.mxu2 }
 0x24d   : > { %v824_v46 = vadd.f32 %v1036_v25, %v823_v45 }
 0x24f   : > { %v834_v5 = vmax.f32 %v824_v46, 0.0 }
 0x251   : > { %842 = vst.msk [vmem:[%s354_s20 + $0x30] sm:$0xff] %vm786_vm3, %v834_v5 }
 0x254   : > { %v825_v6 = vpop.f32.mrf.mxu2 }
 0x255   : > { %v826_v7 = vadd.f32 %v1036_v25, %v825_v6 }
 0x257   : > { %v835_v8 = vmax.f32 %v826_v7, 0.0 }
 0x259   : > { %843 = vst.msk [vmem:[%s354_s20 + $0x38] sm:$0xff] %vm786_vm3, %v835_v8 }
 0x25a PF: > { %s18_s27 = sadd.s32 1, %s1043_s27  }
 0x25b   : > { %p15_p4 = scmp.ge.s32.totalorder %s18_s27, 4  }
 0x25d   :  { %17 = sbr.rel (!%p15_p4) target bundleno = 1 (0x1), region = 88 }

</bundles_post_ra>
